<compile_context>
chip_gen: v7x
topology: tpu7x:2x2x1
jax: 0.10.0
libtpu: 0.0.40
codegen_flags: <defaults>
</compile_context>

<pallas_src>
import numpy as np
import jax
import jax.numpy as jnp
from jax import lax
from jax.experimental import pallas as pl
from jax.experimental.pallas import tpu as pltpu


_SQRT_HALF = 0.7071067811865476


def _gelu_erf(x):
    # erf-based GELU matching torch.nn.GELU(): erf via the Abramowitz & Stegun
    # 7.1.26 polynomial (|err| <= 1.5e-7); the divide uses the EUP approximate
    # reciprocal so the whole chain is exp/recip (EUP) + FMA (VPU).
    a1, a2, a3, a4, a5 = 0.254829592, -0.284496736, 1.421413741, -1.453152027, 1.061405429
    p = 0.3275911
    z = jnp.abs(x) * _SQRT_HALF
    t = pl.reciprocal(1.0 + p * z, approx=True)
    poly = ((((a5 * t + a4) * t + a3) * t + a2) * t + a1) * t
    erf_z = 1.0 - poly * jnp.exp(-z * z)
    erf_x = jnp.where(x >= 0, erf_z, -erf_z)
    return 0.5 * x * (1.0 + erf_x)


def dino_head_kernel(x_ref, w1_ref, b1_ref, w2_ref, wp_ref, bp_ref, out_ref):
    # x_ref:  (Bt, S, D)  DINO patch tokens for Bt batch elements (native dtype)
    # w1_ref: (D, H1)     mlp_block Linear(384,64) weight, stored (in, out)
    # b1_ref: (1, H1)     mlp_block Linear(384,64) bias (f32)
    # w2_ref: (1, H1)     mlp_block Linear(64,1) weight as a row (its bias is
    #                     dropped: softmax over S is invariant to it)
    # wp_ref: (D, O)      projection Linear(384,O) weight, stored (in, out)
    # bp_ref: (1, O)      projection bias (f32)
    # out_ref:(Bt, 1, O)
    Bt, S, D = x_ref.shape
    H1 = w1_ref.shape[1]
    O = wp_ref.shape[1]
    xdtype = x_ref.dtype

    # --- MLP first layer for the whole block: (Bt*S, D) @ (D, H1) on the MXU,
    # f32 accumulation; bias + GELU stay in f32 on the VPU/EUP.
    tok2 = x_ref[...].reshape(Bt * S, D)
    h = jnp.dot(tok2, w1_ref[...], preferred_element_type=jnp.float32) + b1_ref[...]
    g = _gelu_erf(h)                                                   # (Bt*S, H1) f32

    # --- Linear(64,1) as a single NT matmul -> lane-dense scores (1, Bt*S).
    # (Scalar bias omitted: softmax over the token axis is invariant to it.)
    s_all = lax.dot_general(
        w2_ref[...], g,
        dimension_numbers=(((1,), (1,)), ((), ())),
        preferred_element_type=jnp.float32)                           # (1, Bt*S)

    pooled_rows = []
    inv_rows = []
    for b in range(Bt):          # small static unroll; heavy matmuls are batched above/below
        s = s_all[:, b * S:(b + 1) * S]                               # (1, S) aligned lane slice
        m = jnp.max(s, axis=-1, keepdims=True)                        # (1, 1)
        e = jnp.exp(s - m)                                            # (1, S)
        denom = jnp.sum(e, axis=-1, keepdims=True)                    # (1, 1)
        inv_rows.append(pl.reciprocal(denom, approx=True))
        # Attention pooling on the MXU with deferred normalization: (1,S)@(S,D).
        pooled_rows.append(
            jnp.dot(e.astype(xdtype), x_ref[b], preferred_element_type=jnp.float32))

    pooled = pooled_rows[0] if Bt == 1 else jnp.concatenate(pooled_rows, axis=0)  # (Bt, D) f32
    inv = inv_rows[0] if Bt == 1 else jnp.concatenate(inv_rows, axis=0)           # (Bt, 1) f32

    # --- Projection Linear(384, O) for the whole block; normalize afterwards
    # (scaling commutes with the linear map), then add bias.
    proj = jnp.dot(pooled.astype(wp_ref.dtype), wp_ref[...],
                   preferred_element_type=jnp.float32)                # (Bt, O) f32
    out = proj * inv + bp_ref[...]                                    # (Bt, O)
    out_ref[...] = out.reshape(Bt, 1, O).astype(out_ref.dtype)


def dino_attention_pool_head(tokens, w1, b1, w2, b2, wp, bp, *, block_b=None):
    """Fused DINOEncoder head (post-backbone): mlp_block -> softmax over tokens
    -> attention pooling -> projection.  Returns (B, 1, O) like the module.

    `b2` (the Linear(64,1) bias) is accepted for API parity but never sent to
    the kernel: softmax over the token axis is invariant to it.

    block_b: batch elements per grid step.  Default keeps >= 2 "parallel" grid
    steps so both v7x TensorCores are used; on single-TC chips (v5e/v6e) pass
    block_b=B to do the whole batch in one step.
    """
    del b2  # mathematically redundant under the softmax
    B, S, D = tokens.shape
    H1 = w1.shape[1]
    O = wp.shape[1]
    assert w1.shape == (D, H1) and b1.shape == (H1,)
    assert w2.reshape(-1).shape == (H1,)
    assert wp.shape == (D, O) and bp.shape == (O,)

    if block_b is None:
        block_b = 1 if (B % 2) else min(8, B // 2)
    assert B % block_b == 0
    nsteps = B // block_b

    # MXU operands follow the token dtype (bf16 recommended); everything that
    # happens after a matmul (bias, GELU, softmax) stays in f32.
    cdt = tokens.dtype
    w1c = w1.astype(cdt)
    wpc = wp.astype(cdt)
    b1_2d = b1.reshape(1, H1).astype(jnp.float32)
    w2_row = w2.reshape(1, H1).astype(jnp.float32)
    bp_2d = bp.reshape(1, O).astype(jnp.float32)

    it = tokens.dtype.itemsize
    iw = w1c.dtype.itemsize

    # Advisory cost estimate for XLA's scheduler.
    flops = int(B * (2 * S * D * H1 + 2 * S * H1 + 2 * S * D + 2 * D * O))
    transcendentals = int(B * (S * H1 + S))          # GELU exp + softmax exp
    bytes_accessed = int(tokens.size * it + (D * H1 + D * O) * iw
                         + 4 * (H1 + H1 + O) + 4 * B * O)

    # Honest VMEM budget (double-buffered token/output blocks, resident weight
    # tiles, f32 intermediates) with ~2x headroom — a few MiB, not 32-64 MiB.
    vmem_bytes = (
        2 * block_b * S * D * it                       # token block, double-buffered
        + 2 * ((D * H1 + D * O) * iw + 3 * 8 * 128 * 4)  # weight/bias tiles (default dbl-buffer)
        + 2 * block_b * 8 * max(O, 128) * 4            # output block (sublane-padded)
        + 4 * block_b * S * max(H1, 128) * 4           # f32 h/g/intermediate headroom
    )
    vmem_limit = int(2 * vmem_bytes) + (1 << 20)

    out = pl.pallas_call(
        dino_head_kernel,
        out_shape=jax.ShapeDtypeStruct((B, 1, O), jnp.float32),
        grid_spec=pltpu.PrefetchScalarGridSpec(
            num_scalar_prefetch=0,
            grid=(nsteps,),
            in_specs=[
                pl.BlockSpec((block_b, S, D), lambda b: (b, 0, 0)),
                pl.BlockSpec((D, H1), lambda b: (0, 0)),
                pl.BlockSpec((1, H1), lambda b: (0, 0)),
                pl.BlockSpec((1, H1), lambda b: (0, 0)),
                pl.BlockSpec((D, O), lambda b: (0, 0)),
                pl.BlockSpec((1, O), lambda b: (0, 0)),
            ],
            out_specs=pl.BlockSpec((block_b, 1, O), lambda b: (b, 0, 0)),
        ),
        compiler_params=pltpu.CompilerParams(
            dimension_semantics=("parallel",),
            vmem_limit_bytes=vmem_limit),
        cost_estimate=pl.CostEstimate(flops=flops,
                                      transcendentals=transcendentals,
                                      bytes_accessed=bytes_accessed),
    )(tokens, w1c, b1_2d, w2_row, wpc, bp_2d)
    return out


def reference(tokens, w1, b1, w2, b2, wp, bp):
    # Plain-JAX transcription of DINOEncoder.forward after the backbone
    # (mlp_block with Dropout as identity, permute, softmax, einsum, projection),
    # computed in f32 with the exact erf GELU (like torch.nn.GELU()).
    x = tokens.astype(jnp.float32)
    h = jnp.einsum('bsd,dh->bsh', x, w1) + b1                         # Linear(384,64)
    g = jax.nn.gelu(h, approximate=False)                             # nn.GELU()
    scores = jnp.einsum('bsh,hk->bsk', g, w2.reshape(-1, 1)) + b2     # Linear(64,1)
    mask = jax.nn.softmax(jnp.transpose(scores, (0, 2, 1)), axis=-1)  # (B,1,S)
    pooled = jnp.einsum('bks,bsd->bkd', mask, x)                      # (B,1,384)
    return jnp.einsum('bkd,do->bko', pooled, wp) + bp                 # Linear(384,O)


if __name__ == "__main__":
    # Shapes implied by the module: S = (224/14)^2 = 256 patch tokens, D = 384
    # (ViT-S/14), mlp hidden H1 = 64, output_size O chosen lane-dense = 128.
    B, S, D, H1, O = 2, 256, 384, 64, 128

    key = jax.random.PRNGKey(0)
    ks = jax.random.split(key, 7)
    # Backbone activations in bf16 (halves the dominant HBM traffic).
    tokens = jax.random.normal(ks[0], (B, S, D), dtype=jnp.float32).astype(jnp.bfloat16)

    # nn.Linear-style init: U(-1/sqrt(fan_in), 1/sqrt(fan_in)); weights stored
    # pre-transposed as (in, out).
    def linear_params(kw, kb, fin, fout):
        bound = 1.0 / (fin ** 0.5)
        w = jax.random.uniform(kw, (fin, fout), jnp.float32, -bound, bound)
        b = jax.random.uniform(kb, (fout,), jnp.float32, -bound, bound)
        return w, b

    w1, b1 = linear_params(ks[1], ks[2], D, H1)    # mlp_block Linear(384, 64)
    w2, b2 = linear_params(ks[3], ks[4], H1, 1)    # mlp_block Linear(64, 1)
    wp, bp = linear_params(ks[5], ks[6], D, O)     # projection Linear(384, O)

    out = dino_attention_pool_head(tokens, w1, b1, w2, b2, wp, bp)
    out = jax.block_until_ready(out)

    ref = reference(tokens, w1, b1, w2, b2, wp, bp)
    assert out.shape == (B, 1, O)
    # bf16 MXU operands -> tolerance loosened from 1e-5 (see perf review).
    np.testing.assert_allclose(np.asarray(out, dtype=np.float32), np.asarray(ref),
                               rtol=2e-2, atol=2e-2)
    print("KERNEL_OK")
</pallas_src>

<mosaic_0001>
module attributes {stable_mosaic.version = 11 : i64} {
  func.func @dino_head_kernel(%arg0: i32, %arg1: memref<1x256x384xbf16, #tpu.memory_space<vmem>>, %arg2: memref<384x64xbf16, #tpu.memory_space<vmem>>, %arg3: memref<1x64xf32, #tpu.memory_space<vmem>>, %arg4: memref<1x64xf32, #tpu.memory_space<vmem>>, %arg5: memref<384x128xbf16, #tpu.memory_space<vmem>>, %arg6: memref<1x128xf32, #tpu.memory_space<vmem>>, %arg7: memref<1x1x128xf32, #tpu.memory_space<vmem>>) attributes {dimension_semantics = [#tpu.dimension_semantics<parallel>], iteration_bounds = array<i64: 2>, scalar_prefetch = 0 : i64, scratch_operands = 0 : i64, tpu.core_type = #tpu.core_type<tc>, window_params = [{transform_indices = @transform_0, window_bounds = array<i64: 1, 256, 384>}, {pipeline_mode = #tpu.pipeline_mode<synchronous>, transform_indices = @transform_1, window_bounds = array<i64: 384, 64>}, {pipeline_mode = #tpu.pipeline_mode<synchronous>, transform_indices = @transform_2, window_bounds = array<i64: 1, 64>}, {pipeline_mode = #tpu.pipeline_mode<synchronous>, transform_indices = @transform_3, window_bounds = array<i64: 1, 64>}, {pipeline_mode = #tpu.pipeline_mode<synchronous>, transform_indices = @transform_4, window_bounds = array<i64: 384, 128>}, {pipeline_mode = #tpu.pipeline_mode<synchronous>, transform_indices = @transform_5, window_bounds = array<i64: 1, 128>}, {transform_indices = @transform_6, window_bounds = array<i64: 1, 1, 128>}]} {
    %c0 = arith.constant 0 : index
    %c0_0 = arith.constant 0 : index
    %c0_1 = arith.constant 0 : index
    %0 = vector.load %arg1[%c0, %c0_0, %c0_1] : memref<1x256x384xbf16, #tpu.memory_space<vmem>>, vector<1x256x384xbf16>
    %1 = vector.shape_cast %0 : vector<1x256x384xbf16> to vector<256x384xbf16>
    %c0_2 = arith.constant 0 : index
    %c0_3 = arith.constant 0 : index
    %2 = vector.load %arg2[%c0_2, %c0_3] : memref<384x64xbf16, #tpu.memory_space<vmem>>, vector<384x64xbf16>
    %cst = arith.constant dense<0.000000e+00> : vector<256x64xf32>
    %3 = tpu.matmul %1, %2, %cst {dimension_numbers = #tpu.dot_dimension_numbers<[1], [0], [0], [1], [0, 0, 1, 1], [], []>} : vector<256x384xbf16>, vector<384x64xbf16>, vector<256x64xf32> -> vector<256x64xf32>
    %c0_4 = arith.constant 0 : index
    %c0_5 = arith.constant 0 : index
    %4 = vector.load %arg3[%c0_4, %c0_5] : memref<1x64xf32, #tpu.memory_space<vmem>>, vector<1x64xf32>
    %5 = vector.broadcast %4 : vector<1x64xf32> to vector<256x64xf32>
    %6 = arith.addf %3, %5 : vector<256x64xf32>
    %7 = math.absf %6 : vector<256x64xf32>
    %cst_6 = arith.constant 0.707106769 : f32
    %8 = vector.broadcast %cst_6 : f32 to vector<256x64xf32>
    %9 = arith.mulf %7, %8 : vector<256x64xf32>
    %cst_7 = arith.constant 0.327591091 : f32
    %10 = vector.broadcast %cst_7 : f32 to vector<256x64xf32>
    %11 = arith.mulf %10, %9 : vector<256x64xf32>
    %cst_8 = arith.constant 1.000000e+00 : f32
    %12 = vector.broadcast %cst_8 : f32 to vector<256x64xf32>
    %13 = arith.addf %12, %11 : vector<256x64xf32>
    %14 = tpu.reciprocal %13 {approx = true} : vector<256x64xf32> -> vector<256x64xf32>
    %cst_9 = arith.constant 1.06140542 : f32
    %15 = vector.broadcast %cst_9 : f32 to vector<256x64xf32>
    %16 = arith.mulf %15, %14 : vector<256x64xf32>
    %cst_10 = arith.constant -1.45315206 : f32
    %17 = vector.broadcast %cst_10 : f32 to vector<256x64xf32>
    %18 = arith.addf %16, %17 : vector<256x64xf32>
    %19 = arith.mulf %18, %14 : vector<256x64xf32>
    %cst_11 = arith.constant 1.42141378 : f32
    %20 = vector.broadcast %cst_11 : f32 to vector<256x64xf32>
    %21 = arith.addf %19, %20 : vector<256x64xf32>
    %22 = arith.mulf %21, %14 : vector<256x64xf32>
    %cst_12 = arith.constant -0.284496725 : f32
    %23 = vector.broadcast %cst_12 : f32 to vector<256x64xf32>
    %24 = arith.addf %22, %23 : vector<256x64xf32>
    %25 = arith.mulf %24, %14 : vector<256x64xf32>
    %cst_13 = arith.constant 0.254829586 : f32
    %26 = vector.broadcast %cst_13 : f32 to vector<256x64xf32>
    %27 = arith.addf %25, %26 : vector<256x64xf32>
    %28 = arith.mulf %27, %14 : vector<256x64xf32>
    %cst_14 = arith.constant 0.000000e+00 : f32
    %29 = vector.broadcast %cst_14 : f32 to vector<256x64xf32>
    %30 = arith.subf %29, %9 : vector<256x64xf32>
    %31 = arith.mulf %30, %9 : vector<256x64xf32>
    %32 = math.exp %31 : vector<256x64xf32>
    %33 = arith.mulf %28, %32 : vector<256x64xf32>
    %cst_15 = arith.constant 1.000000e+00 : f32
    %34 = vector.broadcast %cst_15 : f32 to vector<256x64xf32>
    %35 = arith.subf %34, %33 : vector<256x64xf32>
    %cst_16 = arith.constant 0.000000e+00 : f32
    %36 = vector.broadcast %cst_16 : f32 to vector<256x64xf32>
    %37 = arith.cmpf oge, %6, %36 : vector<256x64xf32>
    %cst_17 = arith.constant 0.000000e+00 : f32
    %38 = vector.broadcast %cst_17 : f32 to vector<256x64xf32>
    %39 = arith.subf %38, %35 : vector<256x64xf32>
    %40 = arith.select %37, %35, %39 : vector<256x64xi1>, vector<256x64xf32>
    %cst_18 = arith.constant 5.000000e-01 : f32
    %41 = vector.broadcast %cst_18 : f32 to vector<256x64xf32>
    %42 = arith.mulf %41, %6 : vector<256x64xf32>
    %cst_19 = arith.constant 1.000000e+00 : f32
    %43 = vector.broadcast %cst_19 : f32 to vector<256x64xf32>
    %44 = arith.addf %43, %40 : vector<256x64xf32>
    %45 = arith.mulf %42, %44 : vector<256x64xf32>
    %c0_20 = arith.constant 0 : index
    %c0_21 = arith.constant 0 : index
    %46 = vector.load %arg4[%c0_20, %c0_21] : memref<1x64xf32, #tpu.memory_space<vmem>>, vector<1x64xf32>
    %cst_22 = arith.constant dense<0.000000e+00> : vector<1x256xf32>
    %47 = tpu.matmul %46, %45, %cst_22 {dimension_numbers = #tpu.dot_dimension_numbers<[1], [1], [0], [0], [0, 0, 1, 0], [], []>} : vector<1x64xf32>, vector<256x64xf32>, vector<1x256xf32> -> vector<1x256xf32>
    %cst_23 = arith.constant dense<0xFF800000> : vector<1xf32>
    %48 = vector.multi_reduction <maximumf>, %47, %cst_23 [1] : vector<1x256xf32> to vector<1xf32>
    %49 = vector.shape_cast %48 : vector<1xf32> to vector<1x1xf32>
    %50 = vector.broadcast %49 : vector<1x1xf32> to vector<1x256xf32>
    %51 = arith.subf %47, %50 : vector<1x256xf32>
    %52 = math.exp %51 : vector<1x256xf32>
    %cst_24 = arith.constant dense<0.000000e+00> : vector<1xf32>
    %53 = vector.multi_reduction <add>, %52, %cst_24 [1] : vector<1x256xf32> to vector<1xf32>
    %54 = vector.shape_cast %53 : vector<1xf32> to vector<1x1xf32>
    %55 = tpu.reciprocal %54 {approx = true} : vector<1x1xf32> -> vector<1x1xf32>
    %56 = arith.truncf %52 : vector<1x256xf32> to vector<1x256xbf16>
    %c0_25 = arith.constant 0 : index
    %c0_26 = arith.constant 0 : index
    %c0_27 = arith.constant 0 : index
    %57 = vector.load %arg1[%c0_25, %c0_26, %c0_27] : memref<1x256x384xbf16, #tpu.memory_space<vmem>>, vector<1x256x384xbf16>
    %58 = vector.shape_cast %57 : vector<1x256x384xbf16> to vector<256x384xbf16>
    %cst_28 = arith.constant dense<0.000000e+00> : vector<1x384xf32>
    %59 = tpu.matmul %56, %58, %cst_28 {dimension_numbers = #tpu.dot_dimension_numbers<[1], [0], [0], [1], [0, 0, 1, 1], [], []>} : vector<1x256xbf16>, vector<256x384xbf16>, vector<1x384xf32> -> vector<1x384xf32>
    %60 = arith.truncf %59 : vector<1x384xf32> to vector<1x384xbf16>
    %c0_29 = arith.constant 0 : index
    %c0_30 = arith.constant 0 : index
    %61 = vector.load %arg5[%c0_29, %c0_30] : memref<384x128xbf16, #tpu.memory_space<vmem>>, vector<384x128xbf16>
    %cst_31 = arith.constant dense<0.000000e+00> : vector<1x128xf32>
    %62 = tpu.matmul %60, %61, %cst_31 {dimension_numbers = #tpu.dot_dimension_numbers<[1], [0], [0], [1], [0, 0, 1, 1], [], []>} : vector<1x384xbf16>, vector<384x128xbf16>, vector<1x128xf32> -> vector<1x128xf32>
    %63 = vector.broadcast %55 : vector<1x1xf32> to vector<1x128xf32>
    %64 = arith.mulf %62, %63 : vector<1x128xf32>
    %c0_32 = arith.constant 0 : index
    %c0_33 = arith.constant 0 : index
    %65 = vector.load %arg6[%c0_32, %c0_33] : memref<1x128xf32, #tpu.memory_space<vmem>>, vector<1x128xf32>
    %66 = arith.addf %64, %65 : vector<1x128xf32>
    %67 = vector.shape_cast %66 : vector<1x128xf32> to vector<1x1x128xf32>
    %c0_34 = arith.constant 0 : index
    %c0_35 = arith.constant 0 : index
    %c0_36 = arith.constant 0 : index
    %68 = vector.load %arg7[%c0_34, %c0_35, %c0_36] : memref<1x1x128xf32, #tpu.memory_space<vmem>>, vector<1x1x128xf32>
    tpu.vector_store %arg7[%c0_34, %c0_35, %c0_36], %67 {strides = array<i32>} : memref<1x1x128xf32, #tpu.memory_space<vmem>>, vector<1x1x128xf32>,
    return
  }
  func.func @transform_0(%arg0: i32) -> (i32, i32, i32) {
    %c0_i32 = arith.constant 0 : i32
    %c0_i32_0 = arith.constant 0 : i32
    %c0_i32_1 = arith.constant 0 : i32
    return %arg0, %c0_i32, %c0_i32_0 : i32, i32, i32
  }
  func.func @transform_1(%arg0: i32) -> (i32, i32) {
    %c0_i32 = arith.constant 0 : i32
    %c0_i32_0 = arith.constant 0 : i32
    %c0_i32_1 = arith.constant 0 : i32
    return %c0_i32, %c0_i32_0 : i32, i32
  }
  func.func @transform_2(%arg0: i32) -> (i32, i32) {
    %c0_i32 = arith.constant 0 : i32
    %c0_i32_0 = arith.constant 0 : i32
    %c0_i32_1 = arith.constant 0 : i32
    return %c0_i32, %c0_i32_0 : i32, i32
  }
  func.func @transform_3(%arg0: i32) -> (i32, i32) {
    %c0_i32 = arith.constant 0 : i32
    %c0_i32_0 = arith.constant 0 : i32
    %c0_i32_1 = arith.constant 0 : i32
    return %c0_i32, %c0_i32_0 : i32, i32
  }
  func.func @transform_4(%arg0: i32) -> (i32, i32) {
    %c0_i32 = arith.constant 0 : i32
    %c0_i32_0 = arith.constant 0 : i32
    %c0_i32_1 = arith.constant 0 : i32
    return %c0_i32, %c0_i32_0 : i32, i32
  }
  func.func @transform_5(%arg0: i32) -> (i32, i32) {
    %c0_i32 = arith.constant 0 : i32
    %c0_i32_0 = arith.constant 0 : i32
    %c0_i32_1 = arith.constant 0 : i32
    return %c0_i32, %c0_i32_0 : i32, i32
  }
  func.func @transform_6(%arg0: i32) -> (i32, i32, i32) {
    %c0_i32 = arith.constant 0 : i32
    %c0_i32_0 = arith.constant 0 : i32
    %c0_i32_1 = arith.constant 0 : i32
    return %arg0, %c0_i32, %c0_i32_0 : i32, i32, i32
  }
}

</mosaic_0001>

<bundles_post_ra>
// kernel: tpu_custom_call.1
= control target key start
LH: loop header
LB: loop body
LE: loop exit
PB: predicated region body
PF: predicated region fallthrough
CT: control target
= control target key end

     0   :  { %11 = vsyncpa [#allocation3], 0  ;;  %s4925_s0 = inlined_call_operand.hbm [shape: bf16[2,256,384], index: 0, kind: input, shape index: {}]   ;;  %s4926_s1 = inlined_call_operand.vmem [shape: bf16[384,64], index: 1, kind: input, shape index: {}]   ;;  %s4927_s2 = inlined_call_operand.vmem [shape: f32[1,64], index: 2, kind: input, shape index: {}]   ;;  %s4928_s3 = inlined_call_operand.vmem [shape: f32[1,64], index: 3, kind: input, shape index: {}]   ;;  %s4929_s4 = inlined_call_operand.vmem [shape: bf16[384,128], index: 4, kind: input, shape index: {}]   ;;  %s4930_s5 = inlined_call_operand.vmem [shape: f32[1,128], index: 5, kind: input, shape index: {}]   ;;  %s4931_s6 = inlined_call_operand.hbm [shape: f32[2,1,128], index: 6, kind: output, shape index: {}]  }
   0x1   :  { %13 = vsyncpa [#allocation3 + $0x1], 0 }
   0x2   :  { %14 = vsyncpa [#allocation4], 0 }
   0x3   :  { %16 = vsyncpa [#allocation4 + $0x1], 0  ;;  %s3506_s21 = smov 0   ;;  %s3508_s22 = smov 0  }
   0x4   :  { %s3510_s23 = smov 0   ;;  %s3512_s24 = smov 0  }
   0x5 LB: > { %s3527_s25 = sadd.s32 4294967295, %s3463_s24   ;;  %s2574_s26 = sadd.s32 4294967294, %s3463_s24   ;;  %s3463_s24 = sphi %s3512_s24, %s5022_s24   ;;  %s3459_s23 = sphi %s3510_s23, %s5021_s23   ;;  %s3455_s22 = sphi %s3508_s22, %s5020_s22   ;;  %s3451_s21 = sphi %s3506_s21, %s5019_s21  }
   0x6   : > { %s3531_s27 = sadd.s32 1, %s3463_s24   ;;  %s29_s28 = sadd.s32 1, %s3459_s23 }
   0x7   : > { %s26_s29 = ssub.s32 %s3463_s24, %s3531_s27  ;;  %p36_p0 = scmp.ne.s32.totalorder %s3459_s23, %s3455_s22 }
   0x8   : > { %p27_p1 = scmp.eq.s32.totalorder %s26_s29, 0  ;;  %p37_p2 = scmp.eq.s32.totalorder %s3463_s24, 0 }
   0x9   : > { %p42_p3 = scmp.ne.s32.totalorder %s3455_s22, %s3451_s21  ;;  %p43_p4 = scmp.eq.s32.totalorder %s3527_s25, 0 }
   0xa   : > { %s3543_s30 = scalar_select %p27_p1, %s3459_s23, %s29_s28  }
   0xb   : > { %p38_p5 = por %p37_p2, %p36_p0  ;;  %p3545_p6 = por %p43_p4, %p42_p3 }
   0xc   : > { %p171_p7 = scmp.eq.s32.totalorder %s3527_s25, 1  ;;  %p177_p8 = scmp.eq.s32.totalorder %s2574_s26, 1 }
   0xd   : > { %p3066_p10 = scmp.lt.s32.totalorder %s3463_s24, 2  ;;  %s212_s10 = sand.u32 1, %s3459_s23  }
   0xe   : > { %p3552_p11 = por %p171_p7, %p36_p0  ;;  %p3556_p12 = por %p177_p8, %p42_p3 }
   0xf   : > { %s3052_s11 = smul.u32 6144, %s3463_s24  ;;  %p3567_p13 = pnand %p3066_p10, %p38_p5 }
  0x10   : > { %s4945_s8 = scalar_select %p3552_p11, 1, 0 }
  0x11   : > { %s4946_s9 = scalar_select %p3556_p12, 1, 0 }
  0x12   : > { %s3051_s12 = smul.u32 384, %s212_s10  ;;  %s3565_s15 = scalar_lea.hbm %s4925_s0, %s3052_s11 }
  0x13   : > { %s3573_s19 = scalar_lea.sflag [#allocation3], %s212_s10  ;;  %s3367_s20 = scalar_lea.hbm %s3565_s15, 6144 }
  0x14   : > { %s216_s17 = scalar_lea.vmem [#allocation2], %s3051_s12  ;;  %p3368_p0 = scmp.ne.s32.totalorder %s3565_s15, %s3367_s20 }
  0x15   : > { %s223_s18 = sshll.u32 %s216_s17, 4  ;;  %p3369_p1 = pneg %p3567_p13  ;;  %s3571_s18 = int_to_ptr.vmem [resolvable:$true] %s223_s18 }
  0x16   : > { %s3372_s29 = scalar_lea.hbm %s4925_s0, 12288  ;;  %p3373_p4 = scmp.lt.u32.totalorder %s3565_s15, %s4925_s0 }
  0x17   : > { %p3370_p2 = pnand %p3369_p1, %p3368_p0  ;;  %p3374_p5 = scmp.lt.u32.totalorder %s3372_s29, %s3367_s20 }
  0x18   : > { %p3376_p8 = scmp.lt.u32.totalorder %s3367_s20, %s3565_s15 }
  0x19   : > { %p3371_p3 = pneg %p3370_p2  ;;  %p3375_p7 = por %p3374_p5, %p3373_p4 }
  0x1b   : > { %p3377_p10 = por %p3376_p8, %p3375_p7 }
  0x1d   : > { %p3378_p9 = pnand %p3377_p10, %p3371_p3 }
  0x1f   : > { %3381 = shalt.err (!%p3378_p9)
}
  0x20   : > { %s3382_s10 = scalar_lea.vmem %s3571_s18, 6144  ;;  %s3465_s12 = smov [#allocation2]  }
  0x21   : > { %p3383_p0 = scmp.ne.s32.totalorder %s3571_s18, %s3382_s10  ;;  %s3387_s14 = sshll.u32 %s3465_s12, 4  ;;  %s3388_s14 = int_to_ptr.vmem [resolvable:$false] %s3387_s14 }
  0x22   : > { %s3389_s17 = scalar_lea.vmem %s3388_s14, 12288  ;;  %p3390_p11 = scmp.lt.s32.totalorder %s3571_s18, %s3388_s14 }
  0x23   : > { %p3385_p2 = pnand %p3383_p0, %p3369_p1  ;;  %p3391_p4 = scmp.lt.s32.totalorder %s3389_s17, %s3382_s10 }
  0x25   : > { %p3386_p12 = pneg %p3385_p2  ;;  %p3392_p5 = por %p3391_p4, %p3390_p11 }
  0x27   : > { %p3393_p7 = pnand %p3392_p5, %p3386_p12 }
  0x29   : > { %3396 = shalt.err (!%p3393_p7)
}
  0x2a   : > { %s3466_s20 = smov 192   ;;  %s3467_s26 = smov 12  }
  0x2b   : > { %3061 = dma.hbm_to_vmem [thread:$0]  (!%p3567_p13), %s3565_s15, 6144, %s3571_s18, %s3573_s19, %s3466_s20, %s3466_s20, %s3467_s26  }
  0x2c   : > { %p2578_p9 = scmp.ge.s32.totalorder %s3463_s24, 1  ;;  %p231_p1 = scmp.lt.s32.totalorder %s3463_s24, 3 }
  0x2e   : > { %p232_p3 = pnand %p2578_p9, %p231_p1 }
  0x30   : > { %235 = sbr.rel (%p232_p3) target bundleno = 1418 (0x58a), region = 44 }
  0x37   : > { %s3604_s28 = sand.u32 1, %s3455_s22  }
  0x38   : > { %s3053_s29 = smul.u32 384, %s3604_s28  ;;  %s238_s11 = scalar_lea.sflag [#allocation3], %s3604_s28 }
  0x3a   : > { %s3608_s13 = scalar_lea.vmem [#allocation2], %s3053_s29 }
  0x3b   : > { %3442 = dma.done.wait (%p3545_p6), %s238_s11, 6144  }
  0x3c   : > { %3444 = vsyncadd (%p3545_p6), %s238_s11, 4294961152  ;;  %v3104_v0 = vld [vmem:[%s4926_s1 + $0x40] sm:$0xff]   ;;  %v3106_v2 = vld [vmem:[%s4926_s1 + $0x48] sm:$0xff]   ;;  %s2709_s20 = sshll.u32 %s3527_s25, 4  ;;  %s268_s26 = scalar_lea.vmem [#allocation5], %s3604_s28 }
  0x3d   : > { %v3105_v1 = vld [vmem:[%s4926_s1] sm:$0xff]   ;;  %2712 = vmatprep.subr.bf16.mxu0 %v3104_v0  ;;  %v3108_v4 = vld [vmem:[%s4926_s1 + $0x8] sm:$0xff]   ;;  %v3109_v5 = vld [vmem:[%s4926_s1 + $0x50] sm:$0xff]   ;;  %s2508_s29 = sshll.u32 %s268_s26, 4  ;;  %s4881_s16 = scalar_lea.hbm %s4931_s6, %s2709_s20  ;;  %s4883_s29 = int_to_ptr.vmem [resolvable:$true] %s2508_s29 }
  0x3e   : > { %2713 = vmatpush3.bf16.msra.mxu0 %v3105_v1  ;;  %v3107_v3 = vld [vmem:[%s4926_s1 + $0x80] sm:$0xff]   ;;  %v3110_v6 = vld [vmem:[%s4926_s1 + $0x88] sm:$0xff]   ;;  %v3111_v7 = vld [vmem:[%s4926_s1 + $0x10] sm:$0xff]   ;;  %s3397_s18 = scalar_lea.vmem %s4883_s29, 16  ;;  %p5016_p11 = scmp.ne.s32.totalorder %s4945_s8, 0 }
  0x3f   : > { %2714 = vmatprep.subr.bf16.mxu0 %v3106_v2  ;;  %2935 = vmatprep.subr.bf16.mxu1 %v3107_v3  ;;  %v3112_v8 = vld [vmem:[%s4926_s1 + $0x58] sm:$0xff]   ;;  %v3113_v9 = vld [vmem:[%s4926_s1 + $0x90] sm:$0xff]   ;;  %v3115_v11 = vld [vmem:[%s4926_s1 + $0x60] sm:$0xff]   ;;  %p3398_p6 = scmp.ne.s32.totalorder %s4883_s29, %s3397_s18  ;;  %s3470_s25 = smov [#allocation5]  }
  0x40   : > { %2936 = vmatpush3.bf16.msra.mxu1 %v3107_v3  ;;  %v3114_v10 = vld [vmem:[%s4926_s1 + $0x18] sm:$0xff]   ;;  %v3117_v13 = vld [vmem:[%s4926_s1 + $0x20] sm:$0xff]   ;;  %v3118_v15 = vld [vmem:[%s4926_s1 + $0x68] sm:$0xff]   ;;  %s3401_s19 = sshll.u32 %s3470_s25, 4  ;;  %s3402_s19 = int_to_ptr.vmem [resolvable:$false] %s3401_s19 }
  0x41   : > { %2937 = vmatprep.subr.bf16.mxu1 %v3110_v6  ;;  %v3116_v12 = vld [vmem:[%s4926_s1 + $0x98] sm:$0xff]   ;;  %v3119_v14 = vld [vmem:[%s4926_s1 + $0xa0] sm:$0xff]   ;;  %v3120_v16 = vld [vmem:[%s4926_s1 + $0x28] sm:$0xff]   ;;  %p3399_p12 = pnand %p3398_p6, %p5016_p11  ;;  %s3403_s10 = scalar_lea.vmem %s3402_s19, 32 }
  0x42   : > { %2715 = vmatpush3.bf16.msra.mxu0 %v3108_v4  ;;  %v3122_v17 = vld [vmem:[%s4926_s1 + $0xa8] sm:$0xff]   ;;  %v3121_v18 = vld [vmem:[%s4926_s1 + $0x70] sm:$0xff]   ;;  %v3124_v20 = vld [vmem:[%s4926_s1 + $0x78] sm:$0xff]   ;;  %p3404_p8 = scmp.lt.s32.totalorder %s4883_s29, %s3402_s19  ;;  %p3405_p10 = scmp.lt.s32.totalorder %s3403_s10, %s3397_s18 }
  0x43   : > { %2716 = vmatprep.subr.bf16.mxu0 %v3109_v5  ;;  %v3123_v19 = vld [vmem:[%s4926_s1 + $0x30] sm:$0xff]   ;;  %v3126_v23 = vld [vmem:[%s4926_s1 + $0x38] sm:$0xff]   ;;  %v3127_v26 = vld [vmem:[%s3608_s13] ss:$12 sps:$4 sm:$0xff]   ;;  %p3400_p13 = pneg %p3399_p12 }
  0x44   : > { %2938 = vmatpush3.bf16.msra.mxu1 %v3110_v6  ;;  %v3125_v21 = vld [vmem:[%s4926_s1 + $0xb0] sm:$0xff]   ;;  %v3130_v25 = vld [vmem:[%s4926_s1 + $0xb8] sm:$0xff]   ;;  %v3132_v28 = vld [vmem:[%s3608_s13 + $0x20] ss:$12 sps:$4 sm:$0xff]   ;;  %p3406_p0 = por %p3405_p10, %p3404_p8 }
  0x45   : > { %2939 = vmatprep.subr.bf16.mxu1 %v3113_v9  ;;  %v3129_v22 = vld [vmem:[%s3608_s13 + $0x4] ss:$12 sps:$4 sm:$0xff]   ;;  %v3131_v24 = vld [vmem:[%s3608_s13 + $0x8] ss:$12 sps:$4 sm:$0xff]   ;;  %v3141_v34 = vld [vmem:[%s3608_s13 + $0x4c] ss:$12 sps:$4 sm:$0xff]  }
  0x46   : > { %2717 = vmatpush3.bf16.msra.mxu0 %v3111_v7  ;;  %821 = vmatprep.mubr.bf16.mxu0 %v3129_v22  ;;  %v3133_v27 = vld [vmem:[%s3608_s13 + $0x1c] ss:$12 sps:$4 sm:$0xff]   ;;  %v3139_v29 = vld [vmem:[%s3608_s13 + $0x38] ss:$12 sps:$4 sm:$0xff]   ;;  %v3136_v31 = vld [vmem:[%s3608_s13 + $0x34] ss:$12 sps:$4 sm:$0xff]   ;;  %p3407_p2 = pnand %p3406_p0, %p3400_p13 }
  0x47   : > { %2718 = vmatprep.subr.bf16.mxu0 %v3112_v8  ;;  %2951 = vmatprep.mubr.bf16.mxu1 %v3131_v24  ;;  %v3135_v30 = vld [vmem:[%s3608_s13 + $0x18] ss:$12 sps:$4 sm:$0xff]   ;;  %v3138_v32 = vld [vmem:[%s3608_s13 + $0x30] ss:$12 sps:$4 sm:$0xff]   ;;  %v3147_v35 = vld [vmem:[%s3608_s13 + $0x68] ss:$12 sps:$4 sm:$0xff]  }
  0x48   : > { %2940 = vmatpush3.bf16.msra.mxu1 %v3113_v9  ;;  %v3140_v33 = vld [vmem:[%s3608_s13 + $0x50] ss:$12 sps:$4 sm:$0xff]   ;;  %v3143_v36 = vld [vmem:[%s3608_s13 + $0x48] ss:$12 sps:$4 sm:$0xff]   ;;  %v3146_v38 = vld [vmem:[%s3608_s13 + $0x60] ss:$12 sps:$4 sm:$0xff]  }
  0x49   : > { %2941 = vmatprep.subr.bf16.mxu1 %v3116_v12  ;;  %v3144_v37 = vld [vmem:[%s3608_s13 + $0x64] ss:$12 sps:$4 sm:$0xff]   ;;  %v3148_v39 = vld [vmem:[%s3608_s13 + $0x80] ss:$12 sps:$4 sm:$0xff]   ;;  %v3149_v40 = vld [vmem:[%s3608_s13 + $0x7c] ss:$12 sps:$4 sm:$0xff]  }
  0x4a   : > { %2719 = vmatpush3.bf16.msra.mxu0 %v3114_v10  ;;  %v3155_v41 = vld [vmem:[%s3608_s13 + $0x98] ss:$12 sps:$4 sm:$0xff]   ;;  %v3152_v43 = vld [vmem:[%s3608_s13 + $0x94] ss:$12 sps:$4 sm:$0xff]   ;;  %v3154_v44 = vld [vmem:[%s3608_s13 + $0x90] ss:$12 sps:$4 sm:$0xff]  }
  0x4b   : > { %2720 = vmatprep.subr.bf16.mxu0 %v3115_v11  ;;  %v3151_v42 = vld [vmem:[%s3608_s13 + $0x78] ss:$12 sps:$4 sm:$0xff]   ;;  %v3156_v45 = vld [vmem:[%s3608_s13 + $0xb0] ss:$12 sps:$4 sm:$0xff]   ;;  %v3163_v47 = vld [vmem:[%s3608_s13 + $0xc8] ss:$12 sps:$4 sm:$0xff]  }
  0x4c   : > { %2942 = vmatpush3.bf16.msra.mxu1 %v3116_v12  ;;  %v3157_v46 = vld [vmem:[%s3608_s13 + $0xac] ss:$12 sps:$4 sm:$0xff]   ;;  %v3159_v48 = vld [vmem:[%s3608_s13 + $0xa8] ss:$12 sps:$4 sm:$0xff]   ;;  %v3160_v49 = vld [vmem:[%s3608_s13 + $0xc4] ss:$12 sps:$4 sm:$0xff]  }
  0x4d   : > { %2943 = vmatprep.subr.bf16.mxu1 %v3119_v14  ;;  %v3162_v50 = vld [vmem:[%s3608_s13 + $0xc0] ss:$12 sps:$4 sm:$0xff]   ;;  %v3165_v52 = vld [vmem:[%s3608_s13 + $0xdc] ss:$12 sps:$4 sm:$0xff]   ;;  %v3171_v53 = vld [vmem:[%s3608_s13 + $0xf8] ss:$12 sps:$4 sm:$0xff]  }
  0x4e   : > { %2721 = vmatpush3.bf16.msra.mxu0 %v3117_v13  ;;  %v3164_v51 = vld [vmem:[%s3608_s13 + $0xe0] ss:$12 sps:$4 sm:$0xff]   ;;  %v3167_v54 = vld [vmem:[%s3608_s13 + $0xd8] ss:$12 sps:$4 sm:$0xff]   ;;  %v3170_v56 = vld [vmem:[%s3608_s13 + $0xf0] ss:$12 sps:$4 sm:$0xff]  }
  0x4f   : > { %2722 = vmatprep.subr.bf16.mxu0 %v3118_v15  ;;  %v3168_v55 = vld [vmem:[%s3608_s13 + $0xf4] ss:$12 sps:$4 sm:$0xff]   ;;  %v3172_v57 = vld [vmem:[%s3608_s13 + $0x110] ss:$12 sps:$4 sm:$0xff]   ;;  %v3173_v58 = vld [vmem:[%s3608_s13 + $0x10c] ss:$12 sps:$4 sm:$0xff]  }
  0x50   : > { %2944 = vmatpush3.bf16.msra.mxu1 %v3119_v14  ;;  %v3179_v59 = vld [vmem:[%s3608_s13 + $0x128] ss:$12 sps:$4 sm:$0xff]   ;;  %v3176_v61 = vld [vmem:[%s3608_s13 + $0x124] ss:$12 sps:$4 sm:$0xff]   ;;  %v3178_v62 = vld [vmem:[%s3608_s13 + $0x120] ss:$12 sps:$4 sm:$0xff]  }
  0x51   : > { %2945 = vmatprep.subr.bf16.mxu1 %v3122_v17  ;;  %v3175_v60 = vld [vmem:[%s3608_s13 + $0x108] ss:$12 sps:$4 sm:$0xff]   ;;  %v3180_v63 = vld [vmem:[%s3608_s13 + $0x140] ss:$12 sps:$4 sm:$0xff]   ;;  %v3187_v1 = vld [vmem:[%s3608_s13 + $0x158] ss:$12 sps:$4 sm:$0xff]  }
  0x52   : > { %2723 = vmatpush3.bf16.msra.mxu0 %v3120_v16  ;;  %v3181_v0 = vld [vmem:[%s3608_s13 + $0x13c] ss:$12 sps:$4 sm:$0xff]   ;;  %v3183_v2 = vld [vmem:[%s3608_s13 + $0x138] ss:$12 sps:$4 sm:$0xff]   ;;  %v3184_v3 = vld [vmem:[%s3608_s13 + $0x154] ss:$12 sps:$4 sm:$0xff]  }
  0x53   : > { %2724 = vmatprep.subr.bf16.mxu0 %v3121_v18  ;;  %v3186_v4 = vld [vmem:[%s3608_s13 + $0x150] ss:$12 sps:$4 sm:$0xff]   ;;  %v3189_v6 = vld [vmem:[%s3608_s13 + $0x16c] ss:$12 sps:$4 sm:$0xff]   ;;  %v3191_v7 = vld [vmem:[%s3608_s13 + $0x168] ss:$12 sps:$4 sm:$0xff]  }
  0x54   : > { %2946 = vmatpush3.bf16.msra.mxu1 %v3122_v17  ;;  %v3188_v5 = vld [vmem:[%s3608_s13 + $0x170] ss:$12 sps:$4 sm:$0xff]   ;;  %v3737_v10 = vld [vmem:[%s4927_s2] ss:$0 sm:$0xff] }
  0x55   : > { %2947 = vmatprep.subr.bf16.mxu1 %v3125_v21 }
  0x56   : > { %2725 = vmatpush3.bf16.msra.mxu0 %v3123_v19 }
  0x57   : > { %2726 = vmatprep.subr.bf16.mxu0 %v3124_v20 }
  0x58   : > { %2948 = vmatpush3.bf16.msra.mxu1 %v3125_v21 }
  0x59   : > { %2949 = vmatprep.subr.bf16.mxu1 %v3130_v25 }
  0x5a   : > { %2727 = vmatpush3.bf16.msra.mxu0 %v3126_v23 }
  0x5b   : > { %2135 = vmatprep.subr.bf16.mxu0 %v3129_v22 }
  0x5c   : > { %2950 = vmatpush3.bf16.msra.mxu1 %v3130_v25 }
  0x5d   : > { %822 = vmatmul.mubr.bf16.vlgmr.msra.gmra.mrb[0].mxu0 %v3127_v26 }
  0x5e   : > { %829 = vmatprep.mubr.bf16.mxu0 %v3133_v27  ;;  %2136 = vmatpush1.bf16.msra.mxu0 %v3127_v26 }
  0x5f   : > { %2137 = vmatprep.subr.bf16.mxu0 %v3133_v27  ;;  %2952 = vmatmul.mubr.bf16.vlgmr.msra.gmra.mrb[0].mxu1 %v3132_v28 }
  0x60   : > { %2955 = vmatprep.mubr.bf16.mxu1 %v3139_v29 }
  0x62   : > { %2138 = vmatpush1.bf16.msra.mxu0 %v3135_v30 }
  0x63   : > { %2139 = vmatprep.subr.bf16.mxu0 %v3136_v31 }
  0x65   : > { %830 = vmatmul.mubr.bf16.gmra.mrb[4].mxu0 %v3135_v30 }
  0x66   : > { %837 = vmatprep.mubr.bf16.mxu0 %v3136_v31  ;;  %2140 = vmatpush1.bf16.msra.mxu0 %v3138_v32 }
  0x67   : > { %2141 = vmatprep.subr.bf16.mxu0 %v3141_v34  ;;  %2956 = vmatmul.mubr.bf16.gmra.mrb[4].mxu1 %v3140_v33 }
  0x68   : > { %2959 = vmatprep.mubr.bf16.mxu1 %v3147_v35 }
  0x6a   : > { %2142 = vmatpush1.bf16.msra.mxu0 %v3143_v36 }
  0x6b   : > { %2143 = vmatprep.subr.bf16.mxu0 %v3144_v37 }
  0x6d   : > { %838 = vmatmul.mubr.bf16.gmra.mrb[8].mxu0 %v3138_v32 }
  0x6e   : > { %845 = vmatprep.mubr.bf16.mxu0 %v3141_v34  ;;  %2144 = vmatpush1.bf16.msra.mxu0 %v3146_v38 }
  0x6f   : > { %2145 = vmatprep.subr.bf16.mxu0 %v3149_v40  ;;  %2960 = vmatmul.mubr.bf16.gmra.mrb[8].mxu1 %v3148_v39 }
  0x70   : > { %2963 = vmatprep.mubr.bf16.mxu1 %v3155_v41 }
  0x72   : > { %2146 = vmatpush1.bf16.msra.mxu0 %v3151_v42 }
  0x73   : > { %2147 = vmatprep.subr.bf16.mxu0 %v3152_v43 }
  0x75   : > { %846 = vmatmul.mubr.bf16.gmra.mrb[12].mxu0 %v3143_v36 }
  0x76   : > { %853 = vmatprep.mubr.bf16.mxu0 %v3144_v37  ;;  %2148 = vmatpush1.bf16.msra.mxu0 %v3154_v44 }
  0x77   : > { %2149 = vmatprep.subr.bf16.mxu0 %v3157_v46  ;;  %2964 = vmatmul.mubr.bf16.gmra.mrb[12].mxu1 %v3156_v45 }
  0x78   : > { %2967 = vmatprep.mubr.bf16.mxu1 %v3163_v47 }
  0x7a   : > { %2150 = vmatpush1.bf16.msra.mxu0 %v3159_v48 }
  0x7b   : > { %2151 = vmatprep.subr.bf16.mxu0 %v3160_v49 }
  0x7d   : > { %854 = vmatmul.mubr.bf16.gmra.mrb[16].mxu0 %v3146_v38 }
  0x7e   : > { %861 = vmatprep.mubr.bf16.mxu0 %v3149_v40  ;;  %2152 = vmatpush1.bf16.msra.mxu0 %v3162_v50 }
  0x7f   : > { %2153 = vmatprep.subr.bf16.mxu0 %v3165_v52  ;;  %2968 = vmatmul.mubr.bf16.gmra.mrb[16].mxu1 %v3164_v51 }
  0x80   : > { %2971 = vmatprep.mubr.bf16.mxu1 %v3171_v53 }
  0x82   : > { %2154 = vmatpush1.bf16.msra.mxu0 %v3167_v54 }
  0x83   : > { %2155 = vmatprep.subr.bf16.mxu0 %v3168_v55 }
  0x85   : > { %862 = vmatmul.mubr.bf16.gmra.mrb[20].mxu0 %v3151_v42 }
  0x86   : > { %869 = vmatprep.mubr.bf16.mxu0 %v3152_v43  ;;  %2156 = vmatpush1.bf16.msra.mxu0 %v3170_v56 }
  0x87   : > { %2157 = vmatprep.subr.bf16.mxu0 %v3173_v58  ;;  %2972 = vmatmul.mubr.bf16.gmra.mrb[20].mxu1 %v3172_v57 }
  0x88   : > { %2975 = vmatprep.mubr.bf16.mxu1 %v3179_v59 }
  0x8a   : > { %2158 = vmatpush1.bf16.msra.mxu0 %v3175_v60 }
  0x8b   : > { %2159 = vmatprep.subr.bf16.mxu0 %v3176_v61 }
  0x8d   : > { %870 = vmatmul.mubr.bf16.gmra.mrb[24].mxu0 %v3154_v44 }
  0x8e   : > { %877 = vmatprep.mubr.bf16.mxu0 %v3157_v46  ;;  %2160 = vmatpush1.bf16.msra.mxu0 %v3178_v62 }
  0x8f   : > { %2161 = vmatprep.subr.bf16.mxu0 %v3181_v0  ;;  %2976 = vmatmul.mubr.bf16.gmra.mrb[24].mxu1 %v3180_v63 }
  0x90   : > { %2979 = vmatprep.mubr.bf16.mxu1 %v3187_v1 }
  0x92   : > { %2162 = vmatpush1.bf16.msra.mxu0 %v3183_v2 }
  0x93   : > { %2163 = vmatprep.subr.bf16.mxu0 %v3184_v3 }
  0x95   : > { %878 = vmatmul.mubr.bf16.gmra.mrb[28].mxu0 %v3159_v48 }
  0x96   : > { %885 = vmatprep.mubr.bf16.mxu0 %v3160_v49  ;;  %2164 = vmatpush1.bf16.msra.mxu0 %v3186_v4 }
  0x97   : > { %2165 = vmatprep.subr.bf16.mxu0 %v3189_v6  ;;  %2980 = vmatmul.mubr.bf16.gmra.mrb[28].mxu1 %v3188_v5 }
  0x9a   : > { %2166 = vmatpush1.bf16.msra.mxu0 %v3191_v7 }
  0x9d   : > { %886 = vmatmul.mubr.bf16.gmra.mrb[32].mxu0 %v3162_v50 }
  0x9e   : > { %893 = vmatprep.mubr.bf16.mxu0 %v3165_v52 }
  0xa5   : > { %894 = vmatmul.mubr.bf16.gmra.mrb[36].mxu0 %v3167_v54 }
  0xa6   : > { %901 = vmatprep.mubr.bf16.mxu0 %v3168_v55 }
  0xad   : > { %902 = vmatmul.mubr.bf16.gmra.mrb[40].mxu0 %v3170_v56 }
  0xae   : > { %909 = vmatprep.mubr.bf16.mxu0 %v3173_v58 }
  0xb5   : > { %910 = vmatmul.mubr.bf16.gmra.mrb[44].mxu0 %v3175_v60 }
  0xb6   : > { %917 = vmatprep.mubr.bf16.mxu0 %v3176_v61 }
  0xbd   : > { %918 = vmatmul.mubr.bf16.gmra.mrb[48].mxu0 %v3178_v62 }
  0xbe   : > { %925 = vmatprep.mubr.bf16.mxu0 %v3181_v0 }
  0xc5   : > { %926 = vmatmul.mubr.bf16.gmra.mrb[52].mxu0 %v3183_v2 }
  0xc6   : > { %933 = vmatprep.mubr.bf16.mxu0 %v3184_v3 }
  0xcd   : > { %934 = vmatmul.mubr.bf16.gmra.mrb[56].mxu0 %v3186_v4 }
  0xce   : > { %941 = vmatprep.mubr.bf16.mxu0 %v3189_v6 }
  0xd5   : > { %942 = vmatmul.mubr.bf16.gmra.mrb[60].mxu0 %v3191_v7 }
 0x130   : > { %v2728_v8 = vpop.f32.mrb[0].mxu0 }
 0x131   : > { %v2729_v9 = vpop.f32.mrb[1].mxu0 }
 0x132   : > { %v2730_v11 = vadd.f32 %v2729_v9, %v2728_v8  ;;  %v2731_v12 = vpop.f32.mrb[2].mxu0  ;;  %v2953_v14 = vpop.f32.mrb[0].mxu1 }
 0x133   : > { %v2732_v13 = vpop.f32.mrb[3].mxu0  ;;  %v984_v17 = vpop.f32.mrb[1].mxu1 }
 0x134   : > { %v2733_v15 = vadd.f32 %v2732_v13, %v2731_v12  ;;  %v824_v16 = vadd.f32 %v2730_v11, %v3737_v10  ;;  %v2954_v18 = vpop.f32.mrb[2].mxu1 }
 0x135   : > { %v987_v21 = vpop.f32.mrb[3].mxu1 }
 0x136   : > { %v3740_v19 = vadd.f32 %v984_v17, %v824_v16  ;;  %v827_v20 = vadd.f32 %v2733_v15, %v3737_v10 }
 0x138   : > { %v1111_v22 = vand.u32 2147483647, %v3740_v19  ;;  %v3744_v23 = vadd.f32 %v987_v21, %v827_v20  ;;  %v2734_v24 = vpop.f32.mrb[4].mxu0  ;;  %vm1751_vm0 = vcmp.ge.f32.partialorder %v3740_v19, 0.0 }
 0x139   : > { %v2735_v25 = vpop.f32.mrb[5].mxu0 }
 0x13a   : > { %v1143_v26 = vmul.f32 0.70710677, %v1111_v22  ;;  %v1112_v27 = vand.u32 2147483647, %v3744_v23  ;;  %v2736_v28 = vadd.f32 %v2735_v25, %v2734_v24  ;;  %v2737_v29 = vpop.f32.mrb[6].mxu0  ;;  %v3747_v30 = vpop.f32.mrb[4].mxu1 }
 0x13b   : > { %v2738_v33 = vpop.f32.mrb[7].mxu0  ;;  %v1000_v36 = vpop.f32.mrb[5].mxu1  ;;  %vm1752_vm1 = vcmp.ge.f32.partialorder %v3744_v23, 0.0 }
 0x13c   : > { %v1175_v31 = vmul.f32 0.3275911, %v1143_v26  ;;  %v1144_v32 = vmul.f32 0.70710677, %v1112_v27  ;;  %v832_v34 = vadd.f32 %v2736_v28, %v3737_v10  ;;  %v2739_v35 = vadd.f32 %v2738_v33, %v2737_v29  ;;  %v3750_v39 = vpop.f32.mrb[6].mxu1 }
 0x13d   : > { %v1003_v42 = vpop.f32.mrb[7].mxu1  ;;  %v1559_v56 = vsub.f32 0.0, %v1143_v26 }
 0x13e   : > { %v1207_v37 = vadd.f32 1.0, %v1175_v31  ;;  %v1176_v38 = vmul.f32 0.3275911, %v1144_v32  ;;  %v3752_v40 = vadd.f32 %v2953_v14, %v832_v34  ;;  %v835_v41 = vadd.f32 %v2739_v35, %v3737_v10 }
 0x13f   : > { %v1560_v2 = vsub.f32 0.0, %v1144_v32  ;;  %v1591_v6 = vmul.f32 %v1559_v56, %v1143_v26 }
 0x140   : > { %3216 = vrcp.f32 %v1207_v37  ;;  %v1208_v43 = vadd.f32 1.0, %v1176_v38  ;;  %v2740_v44 = vpop.f32.mrb[8].mxu0  ;;  %v1113_v45 = vand.u32 2147483647, %v3752_v40  ;;  %v3756_v46 = vadd.f32 %v2954_v18, %v835_v41 }
 0x141   : > { %v2741_v47 = vpop.f32.mrb[9].mxu0  ;;  %v1592_v17 = vmul.f32 %v1560_v2, %v1144_v32  ;;  %v1623_v25 = vmul.f32 1.442695, %v1591_v6  ;;  %vm1753_vm4 = vcmp.ge.f32.partialorder %v3752_v40, 0.0 }
 0x142   : > { %v2742_v48 = vadd.f32 %v2741_v47, %v2740_v44  ;;  %v2743_v49 = vpop.f32.mrb[10].mxu0  ;;  %3218 = vrcp.f32 %v1208_v43  ;;  %v3758_v50 = vmul.f32 0.70710677, %v1113_v45  ;;  %v1114_v51 = vand.u32 2147483647, %v3756_v46  ;;  %v3762_v55 = vpop.f32.mrb[8].mxu1 }
 0x143   : > { %v2744_v52 = vpop.f32.mrb[11].mxu0  ;;  %v3767_v59 = vpop.f32.mrb[9].mxu1  ;;  %v1625_v41 = vmul.f32 1.442695, %v1592_v17  ;;  %vm1754_vm5 = vcmp.ge.f32.partialorder %v3756_v46, 0.0 }
 0x144   : > { %v2745_v53 = vadd.f32 %v2744_v52, %v2743_v49  ;;  %v840_v54 = vadd.f32 %v2742_v48, %v3737_v10  ;;  %v1177_v57 = vmul.f32 0.3275911, %v3758_v50  ;;  %v3765_v58 = vmul.f32 0.70710677, %v1114_v51  ;;  %v3772_v62 = vpop.f32.mrb[10].mxu1 }
 0x145   : > { %v3775_v1 = vpop.f32.mrb[11].mxu1 }
 0x146   : > { %v3769_v60 = vadd.f32 %v1000_v36, %v840_v54  ;;  %v843_v61 = vadd.f32 %v2745_v53, %v3737_v10  ;;  %v1209_v63 = vadd.f32 1.0, %v1177_v57  ;;  %v1178_v0 = vmul.f32 0.3275911, %v3765_v58 }
 0x147   : > { %v1561_v53 = vsub.f32 0.0, %v3758_v50 }
 0x148   : > { %v1115_v3 = vand.u32 2147483647, %v3769_v60  ;;  %v3778_v4 = vadd.f32 %v1003_v42, %v843_v61  ;;  %v2746_v5 = vpop.f32.mrb[12].mxu0  ;;  %3220 = vrcp.f32 %v1209_v63  ;;  %v1210_v7 = vadd.f32 1.0, %v1178_v0 }
 0x149   : > { %v2747_v8 = vpop.f32.mrb[13].mxu0  ;;  %vm1755_vm2 = vcmp.ge.f32.partialorder %v3769_v60, 0.0 }
 0x14a   : > { %v3780_v9 = vpop.eup %3216  ;;  %v3782_v11 = vmul.f32 0.70710677, %v1115_v3  ;;  %v1116_v12 = vand.u32 2147483647, %v3778_v4  ;;  %v2748_v14 = vadd.f32 %v2747_v8, %v2746_v5  ;;  %v2749_v15 = vpop.f32.mrb[14].mxu0  ;;  %3222 = vrcp.f32 %v1210_v7 }
 0x14b   : > { %v1271_v13 = vmul.f32 1.0614054, %v3780_v9  ;;  %v3786_v16 = vpop.f32.mrb[12].mxu1  ;;  %v2750_v21 = vpop.f32.mrb[15].mxu0  ;;  %vm1756_vm3 = vcmp.ge.f32.partialorder %v3778_v4, 0.0 }
 0x14c   : > { %v1179_v18 = vmul.f32 0.3275911, %v3782_v11  ;;  %v3789_v20 = vmul.f32 0.70710677, %v1116_v12  ;;  %v3791_v22 = vpop.eup %3218  ;;  %v848_v26 = vadd.f32 %v2748_v14, %v3737_v10  ;;  %v2751_v27 = vadd.f32 %v2750_v21, %v2749_v15  ;;  %v3794_v28 = vpop.f32.mrb[13].mxu1 }
 0x14d   : > { %v1303_v24 = vadd.f32 -1.4531521, %v1271_v13  ;;  %v1272_v29 = vmul.f32 1.0614054, %v3791_v22  ;;  %v3798_v33 = vpop.f32.mrb[14].mxu1  ;;  %v1563_v3 = vsub.f32 0.0, %v3782_v11 }
 0x14e   : > { %v1211_v31 = vadd.f32 1.0, %v1179_v18  ;;  %v1180_v32 = vmul.f32 0.3275911, %v3789_v20  ;;  %v3802_v35 = vadd.f32 %v3747_v30, %v848_v26  ;;  %v851_v36 = vadd.f32 %v2751_v27, %v3737_v10  ;;  %v3805_v37 = vpop.f32.mrb[15].mxu1 }
 0x14f   : > { %v1335_v34 = vmul.f32 %v3780_v9, %v1303_v24  ;;  %v1304_v38 = vadd.f32 -1.4531521, %v1272_v29  ;;  %v1564_v26 = vsub.f32 0.0, %v3789_v20 }
 0x150   : > { %3224 = vrcp.f32 %v1211_v31  ;;  %v1212_v42 = vadd.f32 1.0, %v1180_v32  ;;  %v2752_v43 = vpop.f32.mrb[16].mxu0  ;;  %v1117_v45 = vand.u32 2147483647, %v3802_v35  ;;  %v3810_v49 = vadd.f32 %v3750_v39, %v851_v36 }
 0x151   : > { %v1367_v44 = vadd.f32 1.4214138, %v1335_v34  ;;  %v2753_v47 = vpop.f32.mrb[17].mxu0  ;;  %3226 = vpow2.f32 %v1623_v25  ;;  %v1336_v48 = vmul.f32 %v3791_v22, %v1304_v38  ;;  %v1593_v25 = vmul.f32 %v1561_v53, %v3758_v50 }
 0x152   : > { %v3812_v30 = vpop.f32.mrb[18].mxu0  ;;  %v3814_v51 = vpop.eup %3220  ;;  %3228 = vrcp.f32 %v1212_v42  ;;  %v3818_v54 = vmul.f32 0.70710677, %v1117_v45  ;;  %v1118_v39 = vand.u32 2147483647, %v3810_v49  ;;  %v2754_v0 = vadd.f32 %v2753_v47, %v2752_v43 }
 0x153   : > { %v1399_v52 = vmul.f32 %v3780_v9, %v1367_v44  ;;  %v3820_v56 = vpop.f32.mrb[19].mxu0  ;;  %v3822_v57 = vpop.f32.mrb[16].mxu1  ;;  %v1368_v61 = vadd.f32 1.4214138, %v1336_v48  ;;  %v1273_v63 = vmul.f32 1.0614054, %v3814_v51  ;;  %3230 = vpow2.f32 %v1625_v41 }
 0x154   : > { %v1181_v5 = vmul.f32 0.3275911, %v3818_v54  ;;  %v3828_v6 = vpop.f32.mrb[17].mxu1  ;;  %v3830_v7 = vpop.eup %3222  ;;  %v3833_v13 = vmul.f32 0.70710677, %v1118_v39  ;;  %v1595_v34 = vmul.f32 %v1563_v3, %v3782_v11  ;;  %v3854_v44 = vmul.f32 0.5, %v3740_v19 }
 0x155   : > { %v1431_v2 = vadd.f32 -0.28449672, %v1399_v52  ;;  %v1400_v8 = vmul.f32 %v3791_v22, %v1368_v61  ;;  %v1305_v12 = vadd.f32 -1.4531521, %v1273_v63  ;;  %v3835_v14 = vpop.f32.mrb[18].mxu1  ;;  %v1596_v63 = vmul.f32 %v1564_v26, %v3789_v20 }
 0x156   : > { %v1274_v17 = vmul.f32 1.0614054, %v3830_v7  ;;  %v1213_v18 = vadd.f32 1.0, %v1181_v5  ;;  %v3839_v21 = vpop.f32.mrb[19].mxu1  ;;  %v1182_v27 = vmul.f32 0.3275911, %v3833_v13 }
 0x157   : > { %v1463_v15 = vmul.f32 %v3780_v9, %v1431_v2  ;;  %v1432_v24 = vadd.f32 -0.28449672, %v1400_v8  ;;  %v1337_v41 = vmul.f32 %v3814_v51, %v1305_v12  ;;  %v3862_v61 = vmul.f32 1.442695, %v1593_v25 }
 0x158   : > { %v3844_v29 = vpop.f32.mrb[20].mxu0  ;;  %v1306_v32 = vadd.f32 -1.4531521, %v1274_v17  ;;  %3232 = vrcp.f32 %v1213_v18  ;;  %v1214_v50 = vadd.f32 1.0, %v1182_v27  ;;  %v1631_v8 = vmul.f32 1.442695, %v1595_v34 }
 0x159   : > { %v1495_v31 = vadd.f32 0.2548296, %v1463_v15  ;;  %v1464_v38 = vmul.f32 %v3791_v22, %v1432_v24  ;;  %v2759_v42 = vpop.f32.mrb[21].mxu0  ;;  %v1369_v17 = vadd.f32 1.4214138, %v1337_v41  ;;  %v1562_v18 = vsub.f32 0.0, %v3765_v58 }
 0x15a   : > { %v3847_v36 = vpop.eup %3224  ;;  %v1338_v45 = vmul.f32 %v3830_v7, %v1306_v32  ;;  %v3858_v47 = vpop.f32.mrb[22].mxu0  ;;  %3234 = vrcp.f32 %v1214_v50  ;;  %v2757_v32 = vadd.f32 %v3820_v56, %v3812_v30  ;;  %v1633_v50 = vmul.f32 1.442695, %v1596_v63 }
 0x15b   : > { %v1527_v43 = vmul.f32 %v3780_v9, %v1495_v31  ;;  %v1275_v11 = vmul.f32 1.0614054, %v3847_v36  ;;  %v3860_v48 = vpop.f32.mrb[20].mxu1  ;;  %v3227_v52 = vpop.eup %3226  ;;  %v1496_v53 = vadd.f32 0.2548296, %v1464_v38  ;;  %3236 = vpow2.f32 %v1631_v8 }
 0x15c   : > { %4948 = vst [vmem:[#allocation8_spill] sm:$0xff] %v3860_v48  ;;  %v3865_v39 = vpop.f32.mrb[23].mxu0  ;;  %v3867_v9 = vpop.f32.mrb[21].mxu1  ;;  %v1370_v27 = vadd.f32 1.4214138, %v1338_v45  ;;  %3238 = vpow2.f32 %v1633_v50  ;;  %vm1757_vm6 = vcmp.ge.f32.partialorder %v3802_v35, 0.0 }
 0x15d   : > { %v3869_v2 = vpop.eup %3228  ;;  %v1687_v3 = vmul.f32 %v3227_v52, %v1527_v43  ;;  %v1307_v5 = vadd.f32 -1.4531521, %v1275_v11  ;;  %v3872_v12 = vpop.f32.mrb[22].mxu1  ;;  %v1528_v15 = vmul.f32 %v3791_v22, %v1496_v53  ;;  %v856_v22 = vadd.f32 %v2754_v0, %v3737_v10 }
 0x15e   : > { %4949 = vst [vmem:[#allocation9_spill] sm:$0xff] %v3872_v12  ;;  %v1276_v20 = vmul.f32 1.0614054, %v3869_v2  ;;  %v3877_v24 = vpop.f32.mrb[23].mxu1  ;;  %v3231_v25 = vpop.eup %3230  ;;  %v859_v52 = vadd.f32 %v2757_v32, %v3737_v10  ;;  %v1402_v8 = vmul.f32 %v3830_v7, %v1370_v27  ;;  %3240 = vpow2.f32 %v3862_v61 }
 0x15f   : > { %4950 = vst [vmem:[#allocation10_spill] sm:$0xff] %v3877_v24  ;;  %v1719_v26 = vsub.f32 1.0, %v1687_v3  ;;  %v1339_v31 = vmul.f32 %v3847_v36, %v1307_v5  ;;  %v1688_v34 = vmul.f32 %v3231_v25, %v1528_v15  ;;  %v1401_v3 = vmul.f32 %v3814_v51, %v1369_v17 }
 0x160   : > { %v1308_v38 = vadd.f32 -1.4531521, %v1276_v20  ;;  %v3883_v41 = vpop.f32.mrb[24].mxu0  ;;  %v3891_v30 = vadd.f32 %v3767_v59, %v856_v22  ;;  %v3902_v20 = vadd.f32 %v3775_v1, %v859_v52  ;;  %v1434_v52 = vadd.f32 -0.28449672, %v1402_v8 }
 0x161   : > { %v1783_v43 = vsub.f32 0.0, %v1719_v26  ;;  %v1371_v11 = vadd.f32 1.4214138, %v1339_v31  ;;  %v3886_v53 = vpop.f32.mrb[25].mxu0  ;;  %v1720_v45 = vsub.f32 1.0, %v1688_v34  ;;  %v1594_v31 = vmul.f32 %v1562_v18, %v3765_v58 }
 0x162   : > { %v1340_v5 = vmul.f32 %v3869_v2, %v1308_v38  ;;  %v3893_v56 = vpop.f32.mrb[26].mxu0  ;;  %v3895_v0 = vpop.eup %3232  ;;  %v3913_v38 = vadd.f32 %v2759_v42, %v3844_v29  ;;  %vm1759_vm7 = vcmp.ge.f32.partialorder %v3891_v30, 0.0  ;;  %vm1760_vm8 = vcmp.ge.f32.partialorder %v3902_v20, 0.0 }
 0x163   : > { %v1815_v63 = vsel %vm1751_vm0, %v1719_v26, %v1783_v43  ;;  %v1403_v15 = vmul.f32 %v3847_v36, %v1371_v11  ;;  %v3904_v17 = vpop.f32.mrb[27].mxu0  ;;  %v3906_v25 = vpop.f32.mrb[24].mxu1  ;;  %v1784_v59 = vsub.f32 0.0, %v1720_v45  ;;  %v1277_v27 = vmul.f32 1.0614054, %v3895_v0 }
 0x164   : > { %4951 = vst [vmem:[#allocation11_spill] sm:$0xff] %v3906_v25  ;;  %v1372_v32 = vadd.f32 1.4214138, %v1340_v5  ;;  %v3909_v34 = vpop.f32.mrb[25].mxu1  ;;  %v1879_v19 = vadd.f32 1.0, %v1815_v63  ;;  %v3915_v1 = vpop.eup %3234  ;;  %v1848_v43 = vmul.f32 0.5, %v3744_v23 }
 0x165   : > { %4952 = vst [vmem:[#allocation12_spill] sm:$0xff] %v3909_v34  ;;  %v1435_v26 = vadd.f32 -0.28449672, %v1403_v15  ;;  %v1816_v22 = vsel %vm1752_vm1, %v1720_v45, %v1784_v59  ;;  %v1433_v11 = vadd.f32 -0.28449672, %v1401_v3  ;;  %v3921_v18 = vpop.f32.mrb[26].mxu1 }
 0x166   : > { %v1404_v58 = vmul.f32 %v3869_v2, %v1372_v32  ;;  %4953 = vst [vmem:[#allocation13_spill] sm:$0xff] %v3921_v18  ;;  %v1880_v50 = vadd.f32 1.0, %v1816_v22  ;;  %v1309_v63 = vadd.f32 -1.4531521, %v1277_v27  ;;  %v3924_v15 = vpop.f32.mrb[27].mxu1  ;;  %v3928_v45 = vmul.f32 %v1879_v19, %v3854_v44  ;;  %v3237_v22 = vpop.eup %3236 }
 0x167   : > { %v1467_v5 = vmul.f32 %v3847_v36, %v1435_v26  ;;  %4954 = vst [vmem:[#allocation14_spill] sm:$0xff] %v3924_v15  ;;  %v1629_v29 = vmul.f32 1.442695, %v1594_v31  ;;  %v1278_v25 = vmul.f32 1.0614054, %v3915_v1  ;;  %v1465_v8 = vmul.f32 %v3814_v51, %v1433_v11  ;;  %v3239_v18 = vpop.eup %3238 }
 0x168   : > { %v1436_v42 = vadd.f32 -0.28449672, %v1404_v58  ;;  %4955 = vst [vmem:[#allocation15_spill] sm:$0xff] %v3928_v45  ;;  %v3930_v23 = vmul.f32 %v1880_v50, %v1848_v43  ;;  %v3933_v59 = vpop.f32.mrb[28].mxu0  ;;  %v1341_v26 = vmul.f32 %v3895_v0, %v1309_v63  ;;  %v1119_v31 = vand.u32 2147483647, %v3891_v30 }
 0x169   : > { %v1499_v3 = vadd.f32 0.2548296, %v1467_v5  ;;  %v3939_v27 = vpop.f32.mrb[29].mxu0  ;;  %v1466_v19 = vmul.f32 %v3830_v7, %v1434_v52  ;;  %v1310_v43 = vadd.f32 -1.4531521, %v1278_v25  ;;  %3242 = vpow2.f32 %v1629_v29 }
 0x16a   : > { %4956 = vst [vmem:[#allocation16_spill] sm:$0xff] %v3930_v23  ;;  %v1468_v32 = vmul.f32 %v3869_v2, %v1436_v42  ;;  %v3945_v58 = vpop.f32.mrb[30].mxu0  ;;  %v3947_v50 = vmul.f32 0.70710677, %v1119_v31  ;;  %v1565_v42 = vsub.f32 0.0, %v3818_v54  ;;  %vm1758_vm9 = vcmp.ge.f32.partialorder %v3810_v49, 0.0 }
 0x16b   : > { %v1531_v61 = vmul.f32 %v3847_v36, %v1499_v3  ;;  %v3949_v5 = vpop.f32.mrb[31].mxu0  ;;  %v1497_v15 = vadd.f32 0.2548296, %v1465_v8  ;;  %v1373_v45 = vadd.f32 1.4214138, %v1341_v26  ;;  %v3955_v36 = vmul.f32 0.5, %v3752_v40 }
 0x16c   : > { %v1500_v11 = vadd.f32 0.2548296, %v1468_v32  ;;  %v1183_v52 = vmul.f32 0.3275911, %v3947_v50  ;;  %v1498_v25 = vadd.f32 0.2548296, %v1466_v19  ;;  %v1342_v32 = vmul.f32 %v3915_v1, %v1310_v43  ;;  %v3241_v43 = vpop.eup %3240 }
 0x16d   : > { %v1691_v63 = vmul.f32 %v3237_v22, %v1531_v61  ;;  %v1851_v8 = vmul.f32 0.5, %v3769_v60  ;;  %v1529_v19 = vmul.f32 %v3814_v51, %v1497_v15  ;;  %v1566_v15 = vsub.f32 0.0, %v3833_v13 }
 0x16e   : > { %v1532_v44 = vmul.f32 %v3869_v2, %v1500_v11  ;;  %v1215_v31 = vadd.f32 1.0, %v1183_v52  ;;  %v1597_v2 = vmul.f32 %v1565_v42, %v3818_v54  ;;  %v1530_v52 = vmul.f32 %v3830_v7, %v1498_v25 }
 0x16f   : > { %v1723_v29 = vsub.f32 1.0, %v1691_v63  ;;  %v1405_v63 = vmul.f32 %v3895_v0, %v1373_v45  ;;  %v1852_v54 = vmul.f32 0.5, %v3778_v4  ;;  %v1120_v42 = vand.u32 2147483647, %v3902_v20 }
 0x170   : > { %v1692_v3 = vmul.f32 %v3239_v18, %v1532_v44  ;;  %v3959_v22 = vpop.f32.mrb[32].mxu0  ;;  %3244 = vrcp.f32 %v1215_v31  ;;  %v3970_v44 = vpop.f32.mrb[28].mxu1  ;;  %v1374_v51 = vadd.f32 1.4214138, %v1342_v32  ;;  %v3986_v25 = vmul.f32 %v3241_v43, %v1529_v19 }
 0x171   : > { %v1787_v61 = vsub.f32 0.0, %v1723_v29  ;;  %v3964_v26 = vpop.f32.mrb[33].mxu0  ;;  %4957 = vst [vmem:[#allocation17_spill] sm:$0xff] %v3970_v44  ;;  %v1635_v44 = vmul.f32 1.442695, %v1597_v2  ;;  %v864_v32 = vadd.f32 %v3913_v38, %v3737_v10  ;;  %v2763_v4 = vadd.f32 %v3865_v39, %v3858_v47 }
 0x172   : > { %v1724_v11 = vsub.f32 1.0, %v1692_v3  ;;  %v3968_v18 = vpop.f32.mrb[34].mxu0  ;;  %v3980_v3 = vpop.f32.mrb[29].mxu1  ;;  %v3982_v12 = vmul.f32 0.70710677, %v1120_v42  ;;  %v1406_v42 = vmul.f32 %v3915_v1, %v1374_v51  ;;  %v1598_v43 = vmul.f32 %v1566_v15, %v3833_v13 }
 0x173   : > { %v1819_v23 = vsel %vm1755_vm2, %v1723_v29, %v1787_v61  ;;  %v3978_v45 = vpop.f32.mrb[35].mxu0  ;;  %4958 = vst [vmem:[#allocation18_spill] sm:$0xff] %v3980_v3  ;;  %v3984_v7 = vpop.f32.mrb[30].mxu1  ;;  %v1437_v61 = vadd.f32 -0.28449672, %v1405_v63  ;;  %v3998_v19 = vadd.f32 %v3762_v55, %v864_v32  ;;  %v1721_v55 = vsub.f32 1.0, %v3986_v25 }
 0x174   : > { %v1788_v34 = vsub.f32 0.0, %v1724_v11  ;;  %v1883_v31 = vadd.f32 1.0, %v1819_v23  ;;  %4959 = vst [vmem:[#allocation19_spill] sm:$0xff] %v3984_v7  ;;  %v3243_v60 = vpop.eup %3242  ;;  %v3992_v48 = vpop.f32.mrb[31].mxu1  ;;  %v1567_v23 = vsub.f32 0.0, %v3947_v50  ;;  %3246 = vpow2.f32 %v1635_v44 }
 0x175   : > { %4960 = vst [vmem:[#allocation20_spill] sm:$0xff] %v3992_v48  ;;  %v1690_v24 = vmul.f32 %v3243_v60, %v1530_v52  ;;  %v1184_v2 = vmul.f32 0.3275911, %v3982_v12  ;;  %v1469_v47 = vmul.f32 %v3895_v0, %v1437_v61  ;;  %v1121_v39 = vand.u32 2147483647, %v3998_v19 }
 0x176   : > { %v1820_v29 = vsel %vm1756_vm3, %v1724_v11, %v1788_v34  ;;  %v2766_v34 = vadd.f32 %v3886_v53, %v3883_v41  ;;  %v4006_v11 = vmul.f32 %v1883_v31, %v1851_v8  ;;  %v1599_v8 = vmul.f32 %v1567_v23, %v3947_v50 }
 0x177   : > { %v1884_v3 = vadd.f32 1.0, %v1820_v29  ;;  %v1216_v52 = vadd.f32 1.0, %v1184_v2  ;;  %v1722_v53 = vsub.f32 1.0, %v1690_v24  ;;  %v1438_v15 = vadd.f32 -0.28449672, %v1406_v42 }
 0x178   : > { %v4004_v38 = vpop.f32.mrb[36].mxu0  ;;  %4961 = vst [vmem:[#allocation21_spill] sm:$0xff] %v4006_v11  ;;  %v867_v44 = vadd.f32 %v2763_v4, %v3737_v10  ;;  %v2769_v31 = vadd.f32 %v3904_v17, %v3893_v56  ;;  %v4033_v24 = vmul.f32 0.5, %v3756_v46  ;;  %v1637_v25 = vmul.f32 1.442695, %v1598_v43 }
 0x179   : > { %v4008_v63 = vmul.f32 %v1884_v3, %v1852_v54  ;;  %v4011_v60 = vpop.f32.mrb[37].mxu0  ;;  %3248 = vrcp.f32 %v1216_v52  ;;  %v4027_v3 = vmul.f32 0.70710677, %v1121_v39  ;;  %v872_v50 = vadd.f32 %v2766_v34, %v3737_v10 }
 0x17a   : > { %v4018_v41 = vpop.f32.mrb[38].mxu0  ;;  %v4025_v51 = vpop.eup %3244  ;;  %v1785_v61 = vsub.f32 0.0, %v1721_v55  ;;  %v1501_v32 = vadd.f32 0.2548296, %v1469_v47  ;;  %v4038_v23 = vmul.f32 0.5, %v3802_v35  ;;  %v1786_v42 = vsub.f32 0.0, %v1722_v53 }
 0x17b   : > { %4962 = vst [vmem:[#allocation22_spill] sm:$0xff] %v4008_v63  ;;  %v4023_v54 = vpop.f32.mrb[39].mxu0  ;;  %v1279_v29 = vmul.f32 1.0614054, %v4025_v51  ;;  %v1185_v2 = vmul.f32 0.3275911, %v4027_v3  ;;  %v4042_v52 = vadd.f32 %v3772_v62, %v867_v44  ;;  %v4045_v56 = vadd.f32 %v3794_v28, %v872_v50 }
 0x17c   : > { %v1470_v17 = vmul.f32 %v3915_v1, %v1438_v15  ;;  %v1639_v43 = vmul.f32 1.442695, %v1599_v8  ;;  %v875_v34 = vadd.f32 %v2769_v31, %v3737_v10  ;;  %3250 = vpow2.f32 %v1637_v25 }
 0x17d   : > { %v1311_v4 = vadd.f32 -1.4531521, %v1279_v29  ;;  %v1217_v39 = vadd.f32 1.0, %v1185_v2  ;;  %v1568_v11 = vsub.f32 0.0, %v3982_v12  ;;  %v1122_v29 = vand.u32 2147483647, %v4042_v52 }
 0x17e   : > { %v1533_v28 = vmul.f32 %v3895_v0, %v1501_v32  ;;  %v4058_v44 = vmul.f32 0.5, %v3810_v49  ;;  %v1123_v8 = vand.u32 2147483647, %v4045_v56  ;;  %v1817_v31 = vsel %vm1753_vm4, %v1721_v55, %v1785_v61  ;;  %v3247_v0 = vpop.eup %3246 }
 0x17f   : > { %v1343_v13 = vmul.f32 %v4025_v51, %v1311_v4  ;;  %3252 = vrcp.f32 %v1217_v39  ;;  %v1818_v25 = vsel %vm1754_vm5, %v1722_v53, %v1786_v42  ;;  %v4067_v2 = vmul.f32 0.70710677, %v1122_v29 }
 0x180   : > { %v4049_v47 = vpop.f32.mrb[40].mxu0  ;;  %v1502_v32 = vadd.f32 0.2548296, %v1470_v17  ;;  %3254 = vpow2.f32 %v1639_v43  ;;  %v4071_v63 = vmul.f32 0.70710677, %v1123_v8  ;;  %v4074_v39 = vadd.f32 %v3805_v37, %v875_v34 }
 0x181   : > { %v4054_v62 = vpop.f32.mrb[41].mxu0  ;;  %v1375_v50 = vadd.f32 1.4214138, %v1343_v13  ;;  %v1600_v46 = vmul.f32 %v1568_v11, %v3982_v12  ;;  %v1186_v55 = vmul.f32 0.3275911, %v4067_v2  ;;  %v2772_v53 = vadd.f32 %v3939_v27, %v3933_v59 }
 0x182   : > { %v4061_v15 = vpop.f32.mrb[42].mxu0  ;;  %v1881_v13 = vadd.f32 1.0, %v1817_v31  ;;  %v4083_v61 = vmul.f32 %v3247_v0, %v1533_v28  ;;  %v1187_v17 = vmul.f32 0.3275911, %v4071_v63  ;;  %v4087_v37 = vadd.f32 1.0, %v1818_v25 }
 0x183   : > { %v4069_v4 = vpop.f32.mrb[43].mxu0  ;;  %v4076_v7 = vpop.eup %3248  ;;  %v1407_v40 = vmul.f32 %v4025_v51, %v1375_v50  ;;  %v1218_v34 = vadd.f32 1.0, %v1186_v55  ;;  %v1124_v29 = vand.u32 2147483647, %v4074_v39  ;;  %v1534_v12 = vmul.f32 %v3915_v1, %v1502_v32 }
 0x184   : > { %v1280_v42 = vmul.f32 1.0614054, %v4076_v7  ;;  %v4092_v11 = vmul.f32 0.5, %v3891_v30  ;;  %v1219_v59 = vadd.f32 1.0, %v1187_v17  ;;  %v1641_v31 = vmul.f32 1.442695, %v1600_v46 }
 0x185   : > { %v1439_v43 = vadd.f32 -0.28449672, %v1407_v40  ;;  %3256 = vrcp.f32 %v1218_v34  ;;  %v1156_v50 = vmul.f32 0.70710677, %v1124_v29  ;;  %v1725_v0 = vsub.f32 1.0, %v4083_v61 }
 0x186   : > { %v1312_v8 = vadd.f32 -1.4531521, %v1280_v42  ;;  %3258 = vrcp.f32 %v1219_v59  ;;  %v880_v32 = vadd.f32 %v2772_v53, %v3737_v10  ;;  %v3251_v55 = vpop.eup %3250  ;;  %v4106_v42 = vmul.f32 %v1881_v13, %v3955_v36 }
 0x187   : > { %v1471_v28 = vmul.f32 %v4025_v51, %v1439_v43  ;;  %v4109_v17 = vmul.f32 0.5, %v3902_v20  ;;  %v1188_v43 = vmul.f32 0.3275911, %v1156_v50  ;;  %v4115_v29 = vmul.f32 %v3251_v55, %v1534_v12 }
 0x188   : > { %v4094_v27 = vpop.f32.mrb[44].mxu0  ;;  %v1344_v1 = vmul.f32 %v4076_v7, %v1312_v8  ;;  %4965 = vst [vmem:[#allocation25_spill] sm:$0xff] %v4106_v42  ;;  %v4118_v53 = vadd.f32 %v3786_v16, %v880_v32  ;;  %v2775_v59 = vadd.f32 %v3949_v5, %v3945_v58  ;;  %3260 = vpow2.f32 %v1641_v31 }
 0x189   : > { %v4097_v25 = vpop.f32.mrb[45].mxu0  ;;  %v1503_v46 = vadd.f32 0.2548296, %v1471_v28  ;;  %v4113_v61 = vpop.eup %3252  ;;  %v1220_v28 = vadd.f32 1.0, %v1188_v43  ;;  %v1789_v48 = vsub.f32 0.0, %v1725_v0  ;;  %v1569_v12 = vsub.f32 0.0, %v4027_v3 }
 0x18a   : > { %4963 = vst [vmem:[#allocation23_spill] sm:$0xff] %v4097_v25  ;;  %v4103_v40 = vpop.f32.mrb[46].mxu0  ;;  %v1376_v8 = vadd.f32 1.4214138, %v1344_v1  ;;  %v1281_v13 = vmul.f32 1.0614054, %v4113_v61  ;;  %v3255_v42 = vpop.eup %3254  ;;  %v2778_v31 = vadd.f32 %v3964_v26, %v3959_v22 }
 0x18b   : > { %4964 = vst [vmem:[#allocation24_spill] sm:$0xff] %v4103_v40  ;;  %v4111_v34 = vpop.f32.mrb[47].mxu0  ;;  %v1535_v36 = vmul.f32 %v4025_v51, %v1503_v46  ;;  %v1125_v1 = vand.u32 2147483647, %v4118_v53  ;;  %v1571_v32 = vsub.f32 0.0, %v4071_v63  ;;  %3262 = vrcp.f32 %v1220_v28 }
 0x18c   : > { %4966 = vst [vmem:[#allocation26_spill] sm:$0xff] %v4111_v34  ;;  %v1408_v34 = vmul.f32 %v4076_v7, %v1376_v8  ;;  %v1313_v16 = vadd.f32 -1.4531521, %v1281_v13  ;;  %v883_v51 = vadd.f32 %v2775_v59, %v3737_v10  ;;  %v1572_v8 = vsub.f32 0.0, %v1156_v50 }
 0x18d   : > { %v1695_v55 = vmul.f32 %v3255_v42, %v1535_v36  ;;  %v4128_v5 = vmul.f32 0.70710677, %v1125_v1  ;;  %v2781_v36 = vadd.f32 %v3978_v45, %v3968_v18  ;;  %v1603_v18 = vmul.f32 %v1571_v32, %v4071_v63 }
 0x18e   : > { %v1440_v58 = vadd.f32 -0.28449672, %v1408_v34  ;;  %v1345_v42 = vmul.f32 %v4113_v61, %v1313_v16  ;;  %v4145_v22 = vadd.f32 %v3798_v33, %v883_v51  ;;  %v4153_v16 = vsel %vm1757_vm6, %v1725_v0, %v1789_v48 }
 0x18f   : > { %v1727_v13 = vsub.f32 1.0, %v1695_v55  ;;  %v1189_v28 = vmul.f32 0.3275911, %v4128_v5  ;;  %v4149_v1 = vpop.eup %3256  ;;  %v888_v45 = vadd.f32 %v2778_v31, %v3737_v10  ;;  %v1601_v33 = vmul.f32 %v1569_v12, %v4027_v3 }
 0x190   : > { %v4133_v46 = vpop.f32.mrb[48].mxu0  ;;  %v1472_v59 = vmul.f32 %v4076_v7, %v1440_v58  ;;  %v1377_v43 = vadd.f32 1.4214138, %v1345_v42  ;;  %v4159_v58 = vpop.eup %3258  ;;  %v1282_v51 = vmul.f32 1.0614054, %v4149_v1  ;;  %v1570_v35 = vsub.f32 0.0, %v4067_v2 }
 0x191   : > { %4967 = vst [vmem:[#allocation27_spill] sm:$0xff] %v4133_v46  ;;  %v4140_v34 = vpop.f32.mrb[49].mxu0  ;;  %v1283_v48 = vmul.f32 1.0614054, %v4159_v58  ;;  %v1604_v0 = vmul.f32 %v1572_v8, %v1156_v50  ;;  %v1126_v63 = vand.u32 2147483647, %v4145_v22  ;;  %v4169_v12 = vadd.f32 %v3828_v6, %v888_v45 }
 0x192   : > { %4968 = vst [vmem:[#allocation28_spill] sm:$0xff] %v4140_v34  ;;  %v4147_v26 = vpop.f32.mrb[50].mxu0  ;;  %v1504_v34 = vadd.f32 0.2548296, %v1472_v59  ;;  %v1791_v32 = vsub.f32 0.0, %v1727_v13  ;;  %v3261_v59 = vpop.eup %3260  ;;  %v1409_v40 = vmul.f32 %v4113_v61, %v1377_v43  ;;  %vm1763_vm10 = vcmp.ge.f32.partialorder %v4045_v56, 0.0 }
 0x193   : > { %4969 = vst [vmem:[#allocation29_spill] sm:$0xff] %v4147_v26  ;;  %v4157_v55 = vpop.f32.mrb[51].mxu0  ;;  %v1221_v26 = vadd.f32 1.0, %v1189_v28  ;;  %v1314_v42 = vadd.f32 -1.4531521, %v1282_v51  ;;  %v891_v28 = vadd.f32 %v2781_v36, %v3737_v10  ;;  %vm1764_vm11 = vcmp.ge.f32.partialorder %v4074_v39, 0.0 }
 0x194   : > { %4970 = vst [vmem:[#allocation30_spill] sm:$0xff] %v4157_v55  ;;  %v1536_v31 = vmul.f32 %v4076_v7, %v1504_v34  ;;  %v1315_v55 = vadd.f32 -1.4531521, %v1283_v48  ;;  %v1647_v3 = vmul.f32 1.442695, %v1603_v18  ;;  %v4971_v34 = vsub.f32 1.0, %v4115_v29 }
 0x195   : > { %3264 = vrcp.f32 %v1221_v26  ;;  %v1346_v50 = vmul.f32 %v4149_v1, %v1314_v42  ;;  %v4174_v8 = vmul.f32 0.70710677, %v1126_v63  ;;  %v4178_v7 = vpop.eup %3262  ;;  %v1643_v18 = vmul.f32 1.442695, %v1601_v33 }
 0x196   : > { %v1696_v46 = vmul.f32 %v3261_v59, %v1536_v31  ;;  %v1790_v26 = vsub.f32 0.0, %v4971_v34  ;;  %v1347_v6 = vmul.f32 %v4159_v58, %v1315_v55  ;;  %v1649_v45 = vmul.f32 1.442695, %v1604_v0 }
 0x197   : > { %v1823_v10 = vsel %vm1759_vm7, %v1727_v13, %v1791_v32  ;;  %v1378_v36 = vadd.f32 1.4214138, %v1346_v50  ;;  %v1284_v48 = vmul.f32 1.0614054, %v4178_v7  ;;  %v1602_v63 = vmul.f32 %v1570_v35, %v4067_v2 }
 0x198   : > { %v4176_v25 = vpop.f32.mrb[52].mxu0  ;;  %v1728_v43 = vsub.f32 1.0, %v1696_v46  ;;  %v1379_v31 = vadd.f32 1.4214138, %v1347_v6  ;;  %v1190_v42 = vmul.f32 0.3275911, %v4174_v8  ;;  %v4191_v59 = vadd.f32 %v3839_v21, %v891_v28 }
 0x199   : > { %v4183_v51 = vpop.f32.mrb[53].mxu0  ;;  %v1441_v33 = vadd.f32 -0.28449672, %v1409_v40  ;;  %3266 = vpow2.f32 %v1647_v3  ;;  %v1316_v0 = vadd.f32 -1.4531521, %v1284_v48  ;;  %v1887_v46 = vadd.f32 1.0, %v1823_v10 }
 0x19a   : > { %v1792_v55 = vsub.f32 0.0, %v1728_v43  ;;  %v4194_v30 = vpop.f32.mrb[54].mxu0  ;;  %3268 = vpow2.f32 %v1643_v18  ;;  %v1411_v13 = vmul.f32 %v4159_v58, %v1379_v31  ;;  %v1222_v32 = vadd.f32 1.0, %v1190_v42 }
 0x19b   : > { %v4197_v2 = vpop.f32.mrb[55].mxu0  ;;  %v1410_v21 = vmul.f32 %v4149_v1, %v1378_v36  ;;  %v1348_v28 = vmul.f32 %v4178_v7, %v1316_v0  ;;  %3270 = vpow2.f32 %v1649_v45  ;;  %v1645_v3 = vmul.f32 1.442695, %v1602_v63 }
 0x19c   : > { %v1824_v35 = vsel %vm1760_vm8, %v1728_v43, %v1792_v55  ;;  %v1443_v50 = vadd.f32 -0.28449672, %v1411_v13  ;;  %3272 = vrcp.f32 %v1222_v32  ;;  %v1473_v18 = vmul.f32 %v4113_v61, %v1441_v33 }
 0x19d   : > { %v1888_v40 = vadd.f32 1.0, %v1824_v35  ;;  %v1380_v6 = vadd.f32 1.4214138, %v1348_v28  ;;  %v1573_v10 = vsub.f32 0.0, %v4128_v5  ;;  %v1127_v48 = vand.u32 2147483647, %v4169_v12 }
 0x19e   : > { %v4211_v43 = vmul.f32 %v1887_v46, %v4092_v11  ;;  %v1475_v36 = vmul.f32 %v4159_v58, %v1443_v50  ;;  %v4221_v42 = vmul.f32 0.5, %v3998_v19  ;;  %v1442_v55 = vadd.f32 -0.28449672, %v1410_v21 }
 0x19f   : > { %v4203_v34 = vpop.eup %3264  ;;  %v4214_v45 = vmul.f32 %v1888_v40, %v4109_v17  ;;  %v1412_v33 = vmul.f32 %v4178_v7, %v1380_v6  ;;  %v4224_v0 = vmul.f32 0.70710677, %v1127_v48  ;;  %v1885_v11 = vadd.f32 1.0, %v4153_v16 }
 0x1a0   : > { %v4208_v20 = vpop.f32.mrb[56].mxu0  ;;  %4972 = vst [vmem:[#allocation31_spill] sm:$0xff] %v4211_v43  ;;  %v1285_v63 = vmul.f32 1.0614054, %v4203_v34  ;;  %v1507_v46 = vadd.f32 0.2548296, %v1475_v36  ;;  %v4235_v28 = vmul.f32 %v4087_v37, %v4033_v24  ;;  %v1474_v43 = vmul.f32 %v4149_v1, %v1442_v55 }
 0x1a1   : > { %4973 = vst [vmem:[#allocation32_spill] sm:$0xff] %v4214_v45  ;;  %v4218_v31 = vpop.f32.mrb[57].mxu0  ;;  %v1505_v21 = vadd.f32 0.2548296, %v1473_v18  ;;  %v1444_v40 = vadd.f32 -0.28449672, %v1412_v33  ;;  %3274 = vpow2.f32 %v1645_v3 }
 0x1a2   : > { %v4226_v13 = vpop.f32.mrb[58].mxu0  ;;  %v1317_v32 = vadd.f32 -1.4531521, %v1285_v63  ;;  %v1191_v50 = vmul.f32 0.3275911, %v4224_v0  ;;  %v4974_v6 = vsub.f32 1.0, %v4115_v29  ;;  %v1539_v48 = vmul.f32 %v4159_v58, %v1507_v46 }
 0x1a3   : > { %v4231_v35 = vpop.f32.mrb[59].mxu0  ;;  %v1605_v63 = vmul.f32 %v1573_v10, %v4128_v5  ;;  %v3267_v17 = vpop.eup %3266  ;;  %v1476_v24 = vmul.f32 %v4178_v7, %v1444_v40  ;;  %v1574_v29 = vsub.f32 0.0, %v4174_v8  ;;  %v1128_v49 = vand.u32 2147483647, %v4191_v59 }
 0x1a4   : > { %v1822_v16 = vsel %vm1758_vm9, %v4974_v6, %v1790_v26  ;;  %v1349_v36 = vmul.f32 %v4203_v34, %v1317_v32  ;;  %v1223_v37 = vadd.f32 1.0, %v1191_v50  ;;  %v3269_v18 = vpop.eup %3268  ;;  %v1699_v33 = vmul.f32 %v3267_v17, %v1539_v48 }
 0x1a5   : > { %v3271_v26 = vpop.eup %3270  ;;  %v4250_v58 = vmul.f32 %v1885_v11, %v4038_v23  ;;  %v1537_v5 = vmul.f32 %v4113_v61, %v1505_v21  ;;  %v1508_v10 = vadd.f32 0.2548296, %v1476_v24  ;;  %v1651_v32 = vmul.f32 1.442695, %v1605_v63 }
 0x1a6   : > { %v1381_v45 = vadd.f32 1.4214138, %v1349_v36  ;;  %3276 = vrcp.f32 %v1223_v37  ;;  %v4255_v3 = vpop.eup %3272  ;;  %v1731_v46 = vsub.f32 1.0, %v1699_v33  ;;  %v4258_v40 = vmul.f32 0.70710677, %v1128_v49 }
 0x1a7   : > { %v4262_v6 = vadd.f32 1.0, %v1822_v16  ;;  %v1506_v23 = vadd.f32 0.2548296, %v1474_v43  ;;  %v1540_v11 = vmul.f32 %v4178_v7, %v1508_v10  ;;  %v1286_v61 = vmul.f32 1.0614054, %v4255_v3 }
 0x1a8   : > { %v4253_v55 = vpop.f32.mrb[60].mxu0  ;;  %v1413_v17 = vmul.f32 %v4203_v34, %v1381_v45  ;;  %v1795_v48 = vsub.f32 0.0, %v1731_v46  ;;  %v1606_v24 = vmul.f32 %v1574_v29, %v4174_v8  ;;  %v1192_v45 = vmul.f32 0.3275911, %v4258_v40 }
 0x1a9   : > { %v4260_v50 = vpop.f32.mrb[61].mxu0  ;;  %v4272_v37 = vmul.f32 %v3269_v18, %v1537_v5  ;;  %v1700_v16 = vmul.f32 %v3271_v26, %v1540_v11  ;;  %v1318_v43 = vadd.f32 -1.4531521, %v1286_v61  ;;  %v1859_v7 = vmul.f32 0.5, %v4045_v56 }
 0x1aa   : > { %v4266_v21 = vpop.f32.mrb[62].mxu0  ;;  %v1445_v36 = vadd.f32 -0.28449672, %v1413_v17  ;;  %3278 = vpow2.f32 %v1651_v32  ;;  %v1224_v33 = vadd.f32 1.0, %v1192_v45  ;;  %v1538_v49 = vmul.f32 %v4149_v1, %v1506_v23 }
 0x1ab   : > { %v4270_v63 = vpop.f32.mrb[63].mxu0  ;;  %v1827_v10 = vsel %vm1763_vm10, %v1731_v46, %v1795_v48  ;;  %v1732_v8 = vsub.f32 1.0, %v1700_v16  ;;  %v1350_v29 = vmul.f32 %v4255_v3, %v1318_v43  ;;  %v1860_v17 = vmul.f32 0.5, %v4074_v39  ;;  %v3275_v26 = vpop.eup %3274 }
 0x1ac   : > { %v1477_v18 = vmul.f32 %v4203_v34, %v1445_v36  ;;  %v1653_v5 = vmul.f32 1.442695, %v1606_v24  ;;  %3280 = vrcp.f32 %v1224_v33  ;;  %v1729_v11 = vsub.f32 1.0, %v4272_v37 }
 0x1ad   : > { %v1796_v56 = vsub.f32 0.0, %v1732_v8  ;;  %v1382_v61 = vadd.f32 1.4214138, %v1350_v29  ;;  %v1575_v32 = vsub.f32 0.0, %v4224_v0  ;;  %v1891_v45 = vadd.f32 1.0, %v1827_v10 }
 0x1ae   : > { %v2784_v1 = vadd.f32 %v4011_v60, %v4004_v38  ;;  %v2787_v46 = vadd.f32 %v4023_v54, %v4018_v41  ;;  %v2790_v23 = vadd.f32 %v4054_v62, %v4049_v47  ;;  %v1698_v36 = vmul.f32 %v3275_v26, %v1538_v49  ;;  %v4301_v54 = vld [vmem:[%s4927_s2] ss:$0 sm:$0xff]  ;;  %v4977_v26 = vld [vmem:[#allocation10_spill] sm:$0xff] }
 0x1af   : > { %v1828_v24 = vsel %vm1764_vm11, %v1732_v8, %v1796_v56  ;;  %v1414_v37 = vmul.f32 %v4255_v3, %v1382_v61  ;;  %v2793_v16 = vadd.f32 %v4069_v4, %v4061_v15  ;;  %vm1761_vm12 = vcmp.ge.f32.partialorder %v3998_v19, 0.0 }
 0x1b0   : > { %v4289_v48 = vpop.eup %3276  ;;  %v1892_v38 = vadd.f32 1.0, %v1828_v24  ;;  %v1509_v60 = vadd.f32 0.2548296, %v1477_v18  ;;  %v896_v47 = vadd.f32 %v4301_v54, %v2784_v1  ;;  %v899_v39 = vadd.f32 %v4301_v54, %v2787_v46 }
 0x1b1   : > { %v1287_v41 = vmul.f32 1.0614054, %v4289_v48  ;;  %v1446_v62 = vadd.f32 -0.28449672, %v1414_v37  ;;  %v904_v43 = vadd.f32 %v4301_v54, %v2790_v23  ;;  %v907_v15 = vadd.f32 %v4301_v54, %v2793_v16 }
 0x1b2   : > { %v4307_v4 = vmul.f32 %v1891_v45, %v1859_v7  ;;  %v4309_v33 = vmul.f32 %v1892_v38, %v1860_v17  ;;  %v4312_v10 = vadd.f32 %v3822_v57, %v896_v47  ;;  %v1730_v8 = vsub.f32 1.0, %v1698_v36  ;;  %v4988_v7 = vld [vmem:[#allocation12_spill] sm:$0xff] }
 0x1b3   : > { %v1319_v49 = vadd.f32 -1.4531521, %v1287_v41  ;;  %v4315_v29 = vadd.f32 %v3835_v14, %v899_v39  ;;  %v4318_v18 = vadd.f32 %v3867_v9, %v904_v43  ;;  %v4321_v56 = vadd.f32 %v4977_v26, %v907_v15 }
 0x1b4   : > { %4975 = vst [vmem:[#allocation33_spill] sm:$0xff] %v4307_v4  ;;  %4976 = vst [vmem:[#allocation34_spill] sm:$0xff] %v4309_v33  ;;  %v3279_v61 = vpop.eup %3278  ;;  %v1607_v45 = vmul.f32 %v1575_v32, %v4224_v0  ;;  %v1129_v57 = vand.u32 2147483647, %v4312_v10  ;;  %v1793_v1 = vsub.f32 0.0, %v1729_v11  ;;  %v1478_v14 = vmul.f32 %v4255_v3, %v1446_v62 }
 0x1b5   : > { %v1351_v17 = vmul.f32 %v4289_v48, %v1319_v49  ;;  %3282 = vpow2.f32 %v1653_v5  ;;  %v1130_v9 = vand.u32 2147483647, %v4315_v29  ;;  %v1541_v23 = vmul.f32 %v4203_v34, %v1509_v60 }
 0x1b6   : > { %v4330_v46 = vpop.eup %3280  ;;  %v1576_v24 = vsub.f32 0.0, %v4258_v40  ;;  %v1161_v37 = vmul.f32 0.70710677, %v1129_v57  ;;  %vm1762_vm13 = vcmp.ge.f32.partialorder %v4042_v52, 0.0  ;;  %v1794_v16 = vsub.f32 0.0, %v1730_v8 }
 0x1b7   : > { %v1383_v36 = vadd.f32 1.4214138, %v1351_v17  ;;  %v1288_v0 = vmul.f32 1.0614054, %v4330_v46  ;;  %v4336_v32 = vmul.f32 0.70710677, %v1130_v9  ;;  %v1825_v34 = vsel %vm1761_vm12, %v1729_v11, %v1793_v1 }
 0x1b8   : > { %v1858_v38 = vmul.f32 0.5, %v4042_v52  ;;  %v1655_v41 = vmul.f32 1.442695, %v1607_v45  ;;  %v1193_v47 = vmul.f32 0.3275911, %v1161_v37  ;;  %v1701_v43 = vmul.f32 %v3279_v61, %v1541_v23 }
 0x1b9   : > { %v1415_v5 = vmul.f32 %v4289_v48, %v1383_v36  ;;  %v1510_v60 = vadd.f32 0.2548296, %v1478_v14  ;;  %v1320_v62 = vadd.f32 -1.4531521, %v1288_v0  ;;  %v1194_v39 = vmul.f32 0.3275911, %v4336_v32 }
 0x1ba   : > { %v1608_v49 = vmul.f32 %v1576_v24, %v4258_v40  ;;  %v1225_v26 = vadd.f32 1.0, %v1193_v47  ;;  %v1826_v17 = vsel %vm1762_vm13, %v1730_v8, %v1794_v16  ;;  %v1131_v45 = vand.u32 2147483647, %v4318_v18 }
 0x1bb   : > { %v1447_v15 = vadd.f32 -0.28449672, %v1415_v5  ;;  %v1352_v57 = vmul.f32 %v4330_v46, %v1320_v62  ;;  %v1226_v9 = vadd.f32 1.0, %v1194_v39  ;;  %v4350_v19 = vmul.f32 %v4262_v6, %v4058_v44 }
 0x1bc   : > { %v1889_v11 = vadd.f32 1.0, %v1825_v34  ;;  %3284 = vrcp.f32 %v1225_v26  ;;  %v1542_v61 = vmul.f32 %v4255_v3, %v1510_v60  ;;  %v4354_v14 = vmul.f32 0.70710677, %v1131_v45  ;;  %v4983_v45 = vld [vmem:[#allocation26_spill] sm:$0xff] }
 0x1bd   : > { %4978 = vst [vmem:[#allocation10_spill] sm:$0xff] %v4350_v19  ;;  %v1479_v1 = vmul.f32 %v4289_v48, %v1447_v15  ;;  %v1384_v40 = vadd.f32 1.4214138, %v1352_v57  ;;  %3286 = vrcp.f32 %v1226_v9  ;;  %v1890_v52 = vadd.f32 1.0, %v1826_v17  ;;  %v4981_v57 = vld [vmem:[#allocation23_spill] sm:$0xff] }
 0x1be   : > { %v1733_v8 = vsub.f32 1.0, %v1701_v43  ;;  %3288 = vpow2.f32 %v1655_v41  ;;  %v1657_v23 = vmul.f32 1.442695, %v1608_v49  ;;  %vm1765_vm14 = vcmp.ge.f32.partialorder %v4118_v53, 0.0 }
 0x1bf   : > { %v3283_v36 = vpop.eup %3282  ;;  %v4358_v44 = vmul.f32 0.5, %v4118_v53  ;;  %v1416_v6 = vmul.f32 %v4330_v46, %v1384_v40  ;;  %v1195_v24 = vmul.f32 0.3275911, %v4354_v14  ;;  %v4363_v3 = vmul.f32 0.5, %v4145_v22  ;;  %v4986_v53 = vld [vmem:[#allocation8_spill] sm:$0xff] }
 0x1c0   : > { %v1511_v16 = vadd.f32 0.2548296, %v1479_v1  ;;  %v4366_v0 = vmul.f32 0.5, %v4169_v12  ;;  %v1577_v5 = vsub.f32 0.0, %v1161_v37  ;;  %v1702_v41 = vmul.f32 %v3283_v36, %v1542_v61  ;;  %v4985_v1 = vld [vmem:[#allocation28_spill] sm:$0xff] }
 0x1c1   : > { %v1448_v47 = vadd.f32 -0.28449672, %v1416_v6  ;;  %v1227_v34 = vadd.f32 1.0, %v1195_v24  ;;  %v1132_v60 = vand.u32 2147483647, %v4321_v56  ;;  %v4370_v62 = vmul.f32 %v1889_v11, %v4221_v42  ;;  %v4982_v42 = vld [vmem:[#allocation24_spill] sm:$0xff] }
 0x1c2   : > { %v4372_v39 = vmul.f32 %v1890_v52, %v1858_v38  ;;  %v1797_v43 = vsub.f32 0.0, %v1733_v8  ;;  %3290 = vpow2.f32 %v1657_v23  ;;  %v4376_v49 = vmul.f32 0.5, %v4191_v59  ;;  %v4984_v11 = vld [vmem:[#allocation27_spill] sm:$0xff] }
 0x1c3   : > { %4979 = vst [vmem:[#allocation35_spill] sm:$0xff] %v4370_v62  ;;  %v1480_v15 = vmul.f32 %v4330_v46, %v1448_v47  ;;  %3292 = vrcp.f32 %v1227_v34  ;;  %v4378_v26 = vmul.f32 0.70710677, %v1132_v60  ;;  %vm1766_vm15 = vcmp.ge.f32.partialorder %v4145_v22, 0.0 }
 0x1c4   : > { %4980 = vst [vmem:[#allocation36_spill] sm:$0xff] %v4372_v39  ;;  %v1609_v17 = vmul.f32 %v1577_v5, %v1161_v37  ;;  %v2796_v9 = vadd.f32 %v4981_v57, %v4094_v27  ;;  %v2799_v38 = vadd.f32 %v4983_v45, %v4982_v42  ;;  %v2802_v61 = vadd.f32 %v4985_v1, %v4984_v11 }
 0x1c5   : > { %v1734_v40 = vsub.f32 1.0, %v1702_v41  ;;  %v1543_v52 = vmul.f32 %v4289_v48, %v1511_v16  ;;  %v4389_v23 = vmul.f32 0.5, %v4312_v10  ;;  %v1196_v36 = vmul.f32 0.3275911, %v4378_v26 }
 0x1c6   : > { %v4392_v6 = vpop.eup %3284  ;;  %v1829_v37 = vsel %vm1765_vm14, %v1733_v8, %v1797_v43  ;;  %v912_v27 = vadd.f32 %v4301_v54, %v2796_v9  ;;  %v915_v24 = vadd.f32 %v4301_v54, %v2799_v38  ;;  %v920_v5 = vadd.f32 %v4301_v54, %v2802_v61  ;;  %v4987_v43 = vld [vmem:[#allocation9_spill] sm:$0xff] }
 0x1c7   : > { %v4399_v47 = vpop.eup %3286  ;;  %v1512_v41 = vadd.f32 0.2548296, %v1480_v15  ;;  %v1289_v48 = vmul.f32 1.0614054, %v4392_v6  ;;  %v1578_v16 = vsub.f32 0.0, %v4336_v32  ;;  %v1228_v34 = vadd.f32 1.0, %v1196_v36 }
 0x1c8   : > { %v3289_v60 = vpop.eup %3288  ;;  %v1659_v57 = vmul.f32 1.442695, %v1609_v17  ;;  %v1290_v42 = vmul.f32 1.0614054, %v4399_v47  ;;  %v4405_v8 = vadd.f32 %v4986_v53, %v912_v27  ;;  %v4408_v9 = vadd.f32 %v4987_v43, %v915_v24 }
 0x1c9   : > { %v1798_v45 = vsub.f32 0.0, %v1734_v40  ;;  %v1703_v38 = vmul.f32 %v3289_v60, %v1543_v52  ;;  %v1321_v11 = vadd.f32 -1.4531521, %v1289_v48  ;;  %3294 = vrcp.f32 %v1228_v34 }
 0x1ca   : > { %v1893_v15 = vadd.f32 1.0, %v1829_v37  ;;  %v1322_v1 = vadd.f32 -1.4531521, %v1290_v42  ;;  %v1133_v61 = vand.u32 2147483647, %v4405_v8  ;;  %v4412_v36 = vadd.f32 %v4988_v7, %v920_v5  ;;  %v4990_v42 = vld [vmem:[#allocation30_spill] sm:$0xff] }
 0x1cb   : > { %v1544_v17 = vmul.f32 %v4330_v46, %v1512_v41  ;;  %v1353_v4 = vmul.f32 %v4392_v6, %v1321_v11  ;;  %v1610_v27 = vmul.f32 %v1578_v16, %v4336_v32  ;;  %v4418_v24 = vmul.f32 0.5, %v4315_v29 }
 0x1cc   : > { %v3291_v53 = vpop.eup %3290  ;;  %vm1767_vm0 = vcmp.ge.f32.partialorder %v4169_v12, 0.0  ;;  %3296 = vpow2.f32 %v1659_v57  ;;  %v1354_v52 = vmul.f32 %v4399_v47, %v1322_v1  ;;  %v1579_v37 = vsub.f32 0.0, %v4354_v14  ;;  %v4989_v57 = vld [vmem:[#allocation29_spill] sm:$0xff] }
 0x1cd   : > { %v4423_v48 = vmul.f32 0.70710677, %v1133_v61  ;;  %v4425_v7 = vpop.eup %3292  ;;  %v1830_v46 = vsel %vm1766_vm15, %v1734_v40, %v1798_v45  ;;  %v1735_v5 = vsub.f32 1.0, %v1703_v38  ;;  %v1385_v32 = vadd.f32 1.4214138, %v1353_v4 }
 0x1ce   : > { %v1134_v41 = vand.u32 2147483647, %v4408_v9  ;;  %v1386_v16 = vadd.f32 1.4214138, %v1354_v52  ;;  %v1291_v34 = vmul.f32 1.0614054, %v4425_v7  ;;  %v2805_v43 = vadd.f32 %v4990_v42, %v4989_v57 }
 0x1cf   : > { %v1197_v60 = vmul.f32 0.3275911, %v4423_v48  ;;  %v1704_v11 = vmul.f32 %v3291_v53, %v1544_v17  ;;  %v1417_v1 = vmul.f32 %v4392_v6, %v1385_v32  ;;  %v1661_v61 = vmul.f32 1.442695, %v1610_v27 }
 0x1d0   : > { %v4435_v33 = vmul.f32 0.70710677, %v1134_v41  ;;  %v1418_v22 = vmul.f32 %v4399_v47, %v1386_v16  ;;  %v1323_v40 = vadd.f32 -1.4531521, %v1291_v34  ;;  %v1611_v4 = vmul.f32 %v1579_v37, %v4354_v14 }
 0x1d1   : > { %v1229_v45 = vadd.f32 1.0, %v1197_v60  ;;  %v1894_v38 = vadd.f32 1.0, %v1830_v46  ;;  %v1799_v52 = vsub.f32 0.0, %v1735_v5  ;;  %v1449_v39 = vadd.f32 -0.28449672, %v1417_v1 }
 0x1d2   : > { %v1198_v62 = vmul.f32 0.3275911, %v4435_v33  ;;  %v4441_v19 = vmul.f32 %v1893_v15, %v4358_v44  ;;  %vm1768_vm1 = vcmp.ge.f32.partialorder %v4191_v59, 0.0  ;;  %v1450_v17 = vadd.f32 -0.28449672, %v1418_v22 }
 0x1d3   : > { %v1355_v27 = vmul.f32 %v4425_v7, %v1323_v40  ;;  %3298 = vrcp.f32 %v1229_v45  ;;  %v4445_v53 = vpop.eup %3294  ;;  %v1736_v32 = vsub.f32 1.0, %v1704_v11  ;;  %v4448_v14 = vmul.f32 0.5, %v4318_v18 }
 0x1d4   : > { %v1580_v37 = vsub.f32 0.0, %v4378_v26  ;;  %v1230_v46 = vadd.f32 1.0, %v1198_v62  ;;  %3300 = vpow2.f32 %v1661_v61  ;;  %v1663_v16 = vmul.f32 1.442695, %v1611_v4 }
 0x1d5   : > { %v1387_v41 = vadd.f32 1.4214138, %v1355_v27  ;;  %v1292_v44 = vmul.f32 1.0614054, %v4445_v53  ;;  %v4453_v15 = vmul.f32 %v1894_v38, %v4363_v3  ;;  %v1831_v34 = vsel %vm1767_vm0, %v1735_v5, %v1799_v52 }
 0x1d6   : > { %v1481_v60 = vmul.f32 %v4392_v6, %v1449_v39  ;;  %v1135_v57 = vand.u32 2147483647, %v4412_v36  ;;  %v3297_v42 = vpop.eup %3296  ;;  %v1482_v11 = vmul.f32 %v4399_v47, %v1450_v17  ;;  %3302 = vrcp.f32 %v1230_v46 }
 0x1d7   : > { %v1419_v62 = vmul.f32 %v4425_v7, %v1387_v41  ;;  %v1324_v1 = vadd.f32 -1.4531521, %v1292_v44  ;;  %v1800_v61 = vsub.f32 0.0, %v1736_v32  ;;  %v1612_v22 = vmul.f32 %v1580_v37, %v4378_v26  ;;  %v4991_v44 = vld [vmem:[#allocation14_spill] sm:$0xff] }
 0x1d8   : > { %v4463_v3 = vmul.f32 0.5, %v4321_v56  ;;  %v4465_v40 = vmul.f32 0.70710677, %v1135_v57  ;;  %3304 = vpow2.f32 %v1663_v16  ;;  %v1581_v5 = vsub.f32 0.0, %v4423_v48 }
 0x1d9   : > { %v1451_v12 = vadd.f32 -0.28449672, %v1419_v62  ;;  %v1356_v39 = vmul.f32 %v4445_v53, %v1324_v1  ;;  %v1895_v4 = vadd.f32 1.0, %v1831_v34  ;;  %v1513_v45 = vadd.f32 0.2548296, %v1481_v60 }
 0x1da   : > { %v1199_v38 = vmul.f32 0.3275911, %v4465_v40  ;;  %v923_v52 = vadd.f32 %v4301_v54, %v2805_v43  ;;  %v1514_v17 = vadd.f32 0.2548296, %v1482_v11  ;;  %v2808_v37 = vadd.f32 %v4183_v51, %v4176_v25 }
 0x1db   : > { %v1483_v26 = vmul.f32 %v4425_v7, %v1451_v12  ;;  %v1388_v27 = vadd.f32 1.4214138, %v1356_v39  ;;  %v1832_v46 = vsel %vm1768_vm1, %v1736_v32, %v1800_v61  ;;  %v1665_v41 = vmul.f32 1.442695, %v1612_v22 }
 0x1dc   : > { %v1231_v16 = vadd.f32 1.0, %v1199_v38  ;;  %v4477_v57 = vadd.f32 %v4991_v44, %v923_v52  ;;  %v1613_v11 = vmul.f32 %v1581_v5, %v4423_v48  ;;  %v1582_v62 = vsub.f32 0.0, %v4435_v33 }
 0x1dd   : > { %v4479_v34 = vpop.eup %3298  ;;  %v1515_v60 = vadd.f32 0.2548296, %v1483_v26  ;;  %v1420_v43 = vmul.f32 %v4445_v53, %v1388_v27  ;;  %v4485_v1 = vmul.f32 %v1895_v4, %v4366_v0  ;;  %v928_v51 = vadd.f32 %v4301_v54, %v2808_v37 }
 0x1de   : > { %v1293_v25 = vmul.f32 1.0614054, %v4479_v34  ;;  %3306 = vrcp.f32 %v1231_v16  ;;  %v3301_v59 = vpop.eup %3300  ;;  %v1545_v32 = vmul.f32 %v4392_v6, %v1513_v45  ;;  %v1546_v61 = vmul.f32 %v4399_v47, %v1514_v17  ;;  %v4992_v17 = vld [vmem:[#allocation11_spill] sm:$0xff] }
 0x1df   : > { %v1452_v22 = vadd.f32 -0.28449672, %v1420_v43  ;;  %v1136_v12 = vand.u32 2147483647, %v4477_v57  ;;  %v1896_v39 = vadd.f32 1.0, %v1832_v46  ;;  %3308 = vpow2.f32 %v1665_v41 }
 0x1e0   : > { %v1325_v48 = vadd.f32 -1.4531521, %v1293_v25  ;;  %v4493_v5 = vmul.f32 0.5, %v4405_v8  ;;  %v4495_v0 = vpop.eup %3302  ;;  %v1547_v4 = vmul.f32 %v4425_v7, %v1515_v60  ;;  %v1667_v38 = vmul.f32 1.442695, %v1613_v11 }
 0x1e1   : > { %v1614_v52 = vmul.f32 %v1582_v62, %v4435_v33  ;;  %v1168_v26 = vmul.f32 0.70710677, %v1136_v12  ;;  %v1484_v6 = vmul.f32 %v4445_v53, %v1452_v22  ;;  %v1294_v45 = vmul.f32 1.0614054, %v4495_v0 }
 0x1e2   : > { %v1357_v47 = vmul.f32 %v4479_v34, %v1325_v48  ;;  %v4503_v27 = vadd.f32 %v4992_v17, %v928_v51  ;;  %v3305_v37 = vpop.eup %3304  ;;  %v1705_v46 = vmul.f32 %v3297_v42, %v1545_v32  ;;  %v4505_v41 = vmul.f32 %v3301_v59, %v1546_v61 }
 0x1e3   : > { %v1583_v16 = vsub.f32 0.0, %v4465_v40  ;;  %v1200_v7 = vmul.f32 0.3275911, %v1168_v26  ;;  %v1326_v60 = vadd.f32 -1.4531521, %v1294_v45  ;;  %v2811_v43 = vadd.f32 %v4197_v2, %v4194_v30 }
 0x1e4   : > { %v1389_v44 = vadd.f32 1.4214138, %v1357_v47  ;;  %v1137_v33 = vand.u32 2147483647, %v4503_v27  ;;  %v1707_v11 = vmul.f32 %v3305_v37, %v1547_v4  ;;  %3310 = vpow2.f32 %v1667_v38 }
 0x1e5   : > { %v1669_v62 = vmul.f32 1.442695, %v1614_v52  ;;  %v1232_v25 = vadd.f32 1.0, %v1200_v7  ;;  %v1516_v51 = vadd.f32 0.2548296, %v1484_v6  ;;  %v1358_v42 = vmul.f32 %v4495_v0, %v1326_v60 }
 0x1e6   : > { %v1421_v22 = vmul.f32 %v4479_v34, %v1389_v44  ;;  %v4513_v59 = vmul.f32 0.70710677, %v1137_v33  ;;  %v4516_v32 = vmul.f32 %v1896_v39, %v4376_v49  ;;  %v1737_v61 = vsub.f32 1.0, %v1705_v46 }
 0x1e7   : > { %vm1769_vm2 = vcmp.ge.f32.partialorder %v4312_v10, 0.0  ;;  %v4520_v12 = vmul.f32 0.5, %v4408_v9  ;;  %3312 = vrcp.f32 %v1232_v25  ;;  %v1738_v2 = vsub.f32 1.0, %v4505_v41 }
 0x1e8   : > { %v4522_v30 = vpop.eup %3306  ;;  %vm1771_vm3 = vcmp.ge.f32.partialorder %v4318_v18, 0.0  ;;  %v1453_v48 = vadd.f32 -0.28449672, %v1421_v22  ;;  %v1390_v4 = vadd.f32 1.4214138, %v1358_v42  ;;  %v1615_v38 = vmul.f32 %v1583_v16, %v4465_v40 }
 0x1e9   : > { %v1739_v52 = vsub.f32 1.0, %v1707_v11  ;;  %3314 = vpow2.f32 %v1669_v62  ;;  %v1295_v49 = vmul.f32 1.0614054, %v4522_v30  ;;  %v1201_v39 = vmul.f32 0.3275911, %v4513_v59  ;;  %v3309_v6 = vpop.eup %3308 }
 0x1ea   : > { %vm1770_vm4 = vcmp.ge.f32.partialorder %v4315_v29, 0.0  ;;  %v1548_v47 = vmul.f32 %v4445_v53, %v1516_v51  ;;  %v1485_v45 = vmul.f32 %v4479_v34, %v1453_v48  ;;  %v1422_v17 = vmul.f32 %v4495_v0, %v1390_v4 }
 0x1eb   : > { %v1584_v37 = vsub.f32 0.0, %v1168_v26  ;;  %v1801_v46 = vsub.f32 0.0, %v1737_v61  ;;  %v1327_v41 = vadd.f32 -1.4531521, %v1295_v49  ;;  %v4534_v40 = vmul.f32 0.5, %v4412_v36  ;;  %v4993_v49 = vld [vmem:[#allocation13_spill] sm:$0xff] }
 0x1ec   : > { %v1233_v16 = vadd.f32 1.0, %v1201_v39  ;;  %v1802_v7 = vsub.f32 0.0, %v1738_v2  ;;  %v1454_v44 = vadd.f32 -0.28449672, %v1422_v17  ;;  %v1671_v60 = vmul.f32 1.442695, %v1615_v38 }
 0x1ed   : > { %v931_v33 = vadd.f32 %v4301_v54, %v2811_v43  ;;  %v1803_v11 = vsub.f32 0.0, %v1739_v52  ;;  %v1359_v62 = vmul.f32 %v4522_v30, %v1327_v41  ;;  %v2814_v53 = vadd.f32 %v4218_v31, %v4208_v20 }
 0x1ee   : > { %3316 = vrcp.f32 %v1233_v16  ;;  %v1708_v25 = vmul.f32 %v3309_v6, %v1548_v47  ;;  %v1517_v51 = vadd.f32 0.2548296, %v1485_v45  ;;  %v1486_v22 = vmul.f32 %v4495_v0, %v1454_v44  ;;  %v3311_v48 = vpop.eup %3310 }
 0x1ef   : > { %v1616_v42 = vmul.f32 %v1584_v37, %v1168_v26  ;;  %v1391_v4 = vadd.f32 1.4214138, %v1359_v62  ;;  %v4542_v39 = vadd.f32 %v4993_v49, %v931_v33  ;;  %v936_v38 = vadd.f32 %v4301_v54, %v2814_v53  ;;  %v4994_v37 = vld [vmem:[#allocation18_spill] sm:$0xff] }
 0x1f0   : > { %v2817_v43 = vadd.f32 %v4231_v35, %v4226_v13  ;;  %v4549_v17 = vsel %vm1769_vm2, %v1737_v61, %v1801_v46  ;;  %v1518_v20 = vadd.f32 0.2548296, %v1486_v22  ;;  %3318 = vpow2.f32 %v1671_v60 }
 0x1f1   : > { %v2820_v31 = vadd.f32 %v4260_v50, %v4253_v55  ;;  %v4553_v26 = vpop.eup %3312  ;;  %v1835_v6 = vsel %vm1771_vm3, %v1739_v52, %v1803_v11  ;;  %vm1772_vm5 = vcmp.ge.f32.partialorder %v4321_v56, 0.0  ;;  %v1423_v47 = vmul.f32 %v4522_v30, %v1391_v4  ;;  %v4996_v56 = vld [vmem:[#allocation17_spill] sm:$0xff] }
 0x1f2   : > { %v1585_v13 = vsub.f32 0.0, %v4513_v59  ;;  %v1138_v35 = vand.u32 2147483647, %v4542_v39  ;;  %v1740_v10 = vsub.f32 1.0, %v1708_v25  ;;  %v1549_v61 = vmul.f32 %v4479_v34, %v1517_v51 }
 0x1f3   : > { %v1296_v45 = vmul.f32 1.0614054, %v4553_v26  ;;  %v4564_v55 = vadd.f32 %v4994_v37, %v936_v38  ;;  %v3315_v50 = vpop.eup %3314  ;;  %v4568_v18 = vsel %vm1770_vm4, %v1738_v2, %v1802_v7  ;;  %v1455_v52 = vadd.f32 -0.28449672, %v1423_v47 }
 0x1f4   : > { %v1673_v46 = vmul.f32 1.442695, %v1616_v42  ;;  %v1170_v41 = vmul.f32 0.70710677, %v1138_v35  ;;  %v1550_v16 = vmul.f32 %v4495_v0, %v1518_v20  ;;  %v4572_v60 = vmul.f32 0.5, %v4477_v57 }
 0x1f5   : > { %v1328_v44 = vadd.f32 -1.4531521, %v1296_v45  ;;  %v1139_v34 = vand.u32 2147483647, %v4564_v55  ;;  %v1899_v33 = vadd.f32 1.0, %v1835_v6  ;;  %v1487_v11 = vmul.f32 %v4522_v30, %v1455_v52 }
 0x1f6   : > { %v1617_v62 = vmul.f32 %v1585_v13, %v4513_v59  ;;  %v1202_v53 = vmul.f32 0.3275911, %v1170_v41  ;;  %v1804_v29 = vsub.f32 0.0, %v1740_v10  ;;  %v1709_v2 = vmul.f32 %v3311_v48, %v1549_v61 }
 0x1f7   : > { %v1360_v7 = vmul.f32 %v4553_v26, %v1328_v44  ;;  %v1171_v25 = vmul.f32 0.70710677, %v1139_v34  ;;  %v1519_v0 = vadd.f32 0.2548296, %v1487_v11  ;;  %3320 = vpow2.f32 %v1673_v46 }
 0x1f8   : > { %v4578_v51 = vpop.eup %3316  ;;  %v1234_v22 = vadd.f32 1.0, %v1202_v53  ;;  %v939_v42 = vadd.f32 %v4301_v54, %v2817_v43  ;;  %v1710_v4 = vmul.f32 %v3315_v50, %v1550_v16  ;;  %v944_v20 = vadd.f32 %v4301_v54, %v2820_v31  ;;  %v4995_v50 = vld [vmem:[#allocation20_spill] sm:$0xff] }
 0x1f9   : > { %v1392_v49 = vadd.f32 1.4214138, %v1360_v7  ;;  %v1297_v38 = vmul.f32 1.0614054, %v4578_v51  ;;  %vm1773_vm6 = vcmp.ge.f32.partialorder %v4405_v8, 0.0  ;;  %v1551_v59 = vmul.f32 %v4522_v30, %v1519_v0 }
 0x1fa   : > { %v1675_v48 = vmul.f32 1.442695, %v1617_v62  ;;  %3322 = vrcp.f32 %v1234_v22  ;;  %v1203_v6 = vmul.f32 0.3275911, %v1171_v25  ;;  %v3319_v47 = vpop.eup %3318  ;;  %v1836_v13 = vsel %vm1772_vm5, %v1740_v10, %v1804_v29 }
 0x1fb   : > { %v1741_v35 = vsub.f32 1.0, %v1709_v2  ;;  %v1424_v43 = vmul.f32 %v4553_v26, %v1392_v49  ;;  %v1329_v61 = vadd.f32 -1.4531521, %v1297_v38  ;;  %v4589_v45 = vmul.f32 %v1899_v33, %v4448_v14 }
 0x1fc   : > { %vm1774_vm7 = vcmp.ge.f32.partialorder %v4408_v9, 0.0  ;;  %v1586_v31 = vsub.f32 0.0, %v1170_v41  ;;  %v1235_v37 = vadd.f32 1.0, %v1203_v6  ;;  %v4593_v30 = vadd.f32 %v4995_v50, %v939_v42  ;;  %v4997_v9 = vld [vmem:[#allocation19_spill] sm:$0xff] }
 0x1fd   : > { %v1742_v52 = vsub.f32 1.0, %v1710_v4  ;;  %v1456_v46 = vadd.f32 -0.28449672, %v1424_v43  ;;  %v1361_v16 = vmul.f32 %v4578_v51, %v1329_v61  ;;  %v4597_v10 = vadd.f32 %v4996_v56, %v944_v20 }
 0x1fe   : > { %v1900_v44 = vadd.f32 1.0, %v1836_v13  ;;  %v1711_v34 = vmul.f32 %v3319_v47, %v1551_v59  ;;  %3324 = vrcp.f32 %v1235_v37  ;;  %v1140_v14 = vand.u32 2147483647, %v4593_v30 }
 0x1ff   : > { %v1805_v33 = vsub.f32 0.0, %v1741_v35  ;;  %v1488_v11 = vmul.f32 %v4553_v26, %v1456_v46  ;;  %v1393_v62 = vadd.f32 1.4214138, %v1361_v16  ;;  %3326 = vpow2.f32 %v1675_v48 }
 0x200   : > { %v1618_v53 = vmul.f32 %v1586_v31, %v1170_v41  ;;  %v1587_v29 = vsub.f32 0.0, %v1171_v25  ;;  %v1172_v2 = vmul.f32 0.70710677, %v1140_v14  ;;  %v1141_v7 = vand.u32 2147483647, %v4597_v10 }
 0x201   : > { %v1806_v0 = vsub.f32 0.0, %v1742_v52  ;;  %vm1775_vm8 = vcmp.ge.f32.partialorder %v4412_v36, 0.0  ;;  %v1520_v22 = vadd.f32 0.2548296, %v1488_v11  ;;  %v1425_v42 = vmul.f32 %v4578_v51, %v1393_v62  ;;  %v3321_v49 = vpop.eup %3320 }
 0x202   : > { %v2823_v4 = vadd.f32 %v4270_v63, %v4266_v21  ;;  %v4607_v38 = vmul.f32 %v1900_v44, %v4463_v3  ;;  %v1743_v20 = vsub.f32 1.0, %v1711_v34  ;;  %vm1776_vm9 = vcmp.ge.f32.partialorder %v4477_v57, 0.0 }
 0x203   : > { %v1204_v41 = vmul.f32 0.3275911, %v1172_v2  ;;  %v4610_v59 = vmul.f32 0.70710677, %v1141_v7  ;;  %v4614_v48 = vsel %vm1773_vm6, %v1741_v35, %v1805_v33  ;;  %v1552_v6 = vmul.f32 %v4553_v26, %v1520_v22  ;;  %v3357_v7 = vld [vmem:[%s3608_s13 + $0x110] ss:$12 sps:$4 sm:$0xff]  }
 0x204   : > { %v1457_v47 = vadd.f32 -0.28449672, %v1425_v42  ;;  %v947_v13 = vadd.f32 %v4301_v54, %v2823_v4  ;;  %v4618_v21 = vpop.eup %3322  ;;  %v1677_v63 = vmul.f32 1.442695, %v1618_v53  ;;  %v1619_v3 = vmul.f32 %v1587_v29, %v1171_v25  ;;  %v4630_v25 = vld [vmem:[%s4928_s3] sm:$0x1] }
 0x205   : > { %v1236_v43 = vadd.f32 1.0, %v1204_v41  ;;  %v1205_v61 = vmul.f32 0.3275911, %v4610_v59  ;;  %v4623_v31 = vsel %vm1774_vm7, %v1742_v52, %v1806_v0  ;;  %v1712_v37 = vmul.f32 %v3321_v49, %v1552_v6  ;;  %v5000_v49 = vld [vmem:[#allocation16_spill] sm:$0xff]  ;;  %v5001_v41 = vld [vmem:[#allocation15_spill] sm:$0xff] }
 0x206   : > { %v1489_v8 = vmul.f32 %v4578_v51, %v1457_v47  ;;  %v1298_v35 = vmul.f32 1.0614054, %v4618_v21  ;;  %v1807_v26 = vsub.f32 0.0, %v1743_v20  ;;  %v1588_v50 = vsub.f32 0.0, %v1172_v2 }
 0x207   : > { %3328 = vrcp.f32 %v1236_v43  ;;  %v1237_v54 = vadd.f32 1.0, %v1205_v61  ;;  %v1744_v46 = vsub.f32 1.0, %v1712_v37  ;;  %v4633_v52 = vadd.f32 %v4997_v9, %v947_v13 }
 0x208   : > { %v1521_v16 = vadd.f32 0.2548296, %v1489_v8  ;;  %v1330_v56 = vadd.f32 -1.4531521, %v1298_v35  ;;  %v4635_v44 = vpop.eup %3324  ;;  %3330 = vpow2.f32 %v1677_v63  ;;  %v1679_v34 = vmul.f32 1.442695, %v1619_v3 }
 0x209   : > { %vm1944_vm10 = vcmask 523264   ;;  %v3003_v14 = vpack.c.bf16 %v4516_v32, %v4485_v1  ;;  %v3327_v33 = vpop.eup %3326  ;;  %v1808_v11 = vsub.f32 0.0, %v1744_v46  ;;  %v1299_v29 = vmul.f32 1.0614054, %v4635_v44 }
 0x20a   : > { %v1553_v62 = vmul.f32 %v4578_v51, %v1521_v16  ;;  %v1362_v53 = vmul.f32 %v4618_v21, %v1330_v56  ;;  %vm4644_vm11 = vmpackc.low %vm1944_vm10, %vm1944_vm10  ;;  %2880 = vmatprep.mubr.msk.f32.mxu1 %vm1944_vm10, %v4630_v25  ;;  %v1839_v1 = vsel %vm1775_vm8, %v1743_v20, %v1807_v26  ;;  %v1620_v32 = vmul.f32 %v1588_v50, %v1172_v2 }
 0x20b   : > { %3332 = vrcp.f32 %v1237_v54  ;;  %v1142_v51 = vand.u32 2147483647, %v4633_v52  ;;  %3005 = vmatprep.subr.msk.bf16.mxu1 %vm4644_vm11, %v3003_v14  ;;  %v1840_v0 = vsel %vm1776_vm9, %v1744_v46, %v1808_v11  ;;  %v1331_v4 = vadd.f32 -1.4531521, %v1299_v29  ;;  %v5003_v46 = vld [vmem:[#allocation25_spill] sm:$0xff] }
 0x20c   : > { %v1713_v22 = vmul.f32 %v3327_v33, %v1553_v62  ;;  %v1394_v42 = vadd.f32 1.4214138, %v1362_v53  ;;  %v5002_v6 = vpack.c.bf16 %v5000_v49, %v5001_v41  ;;  %v1904_v36 = vadd.f32 1.0, %v1840_v0  ;;  %v5006_v49 = vld [vmem:[#allocation36_spill] sm:$0xff] }
 0x20d   : > { %3334 = vpow2.f32 %v1679_v34  ;;  %v4662_v2 = vmul.f32 0.70710677, %v1142_v51  ;;  %v1897_v20 = vadd.f32 1.0, %v4549_v17  ;;  %v1903_v47 = vadd.f32 1.0, %v1839_v1 }
 0x20e   : > { %3008 = vmatpush3.bf16.xpose.msk.msra.mxu1 %vm4644_vm11, %v5002_v6  ;;  %v1426_v13 = vmul.f32 %v4618_v21, %v1394_v42  ;;  %v1363_v57 = vmul.f32 %v4635_v44, %v1331_v4  ;;  %v1898_v63 = vadd.f32 1.0, %v4568_v18  ;;  %v1745_v3 = vsub.f32 1.0, %v1713_v22  ;;  %v5005_v4 = vld [vmem:[#allocation35_spill] sm:$0xff] }
 0x20f   : > { %v1681_v43 = vmul.f32 1.442695, %v1620_v32  ;;  %v1589_v61 = vsub.f32 0.0, %v4610_v59  ;;  %v1206_v37 = vmul.f32 0.3275911, %v4662_v2  ;;  %v4671_v8 = vmul.f32 %v1904_v36, %v4572_v60 }
 0x210   : > { %vm1777_vm12 = vcmp.ge.f32.partialorder %v4503_v27, 0.0  ;;  %v1458_v35 = vadd.f32 -0.28449672, %v1426_v13  ;;  %v1395_v17 = vadd.f32 1.4214138, %v1363_v57  ;;  %v1930_v26 = vmul.f32 %v1898_v63, %v4418_v24 }
 0x211   : > { %v4675_v50 = vpop.eup %3328  ;;  %v1238_v54 = vadd.f32 1.0, %v1206_v37  ;;  %v1929_v18 = vmul.f32 %v1897_v20, %v4389_v23  ;;  %v3012_v16 = vpack.c.bf16 %v4235_v28, %v5003_v46  ;;  %v3015_v56 = vpack.c.bf16 %v4607_v38, %v4589_v45  ;;  %v5004_v45 = vld [vmem:[#allocation10_spill] sm:$0xff] }
 0x212   : > { %v4683_v60 = vmul.f32 %v1903_v47, %v4534_v40  ;;  %v1490_v9 = vmul.f32 %v4618_v21, %v1458_v35  ;;  %v1427_v34 = vmul.f32 %v4635_v44, %v1395_v17  ;;  %v1300_v24 = vmul.f32 1.0614054, %v4675_v50  ;;  %v3331_v14 = vpop.eup %3330 }
 0x213   : > { %v1621_v33 = vmul.f32 %v1589_v61, %v4610_v59  ;;  %3336 = vrcp.f32 %v1238_v54  ;;  %v3009_v23 = vpack.c.bf16 %v1930_v26, %v1929_v18  ;;  %v1901_v11 = vadd.f32 1.0, %v4614_v48 }
 0x214   : > { %v1522_v28 = vadd.f32 0.2548296, %v1490_v9  ;;  %v1459_v62 = vadd.f32 -0.28449672, %v1427_v34  ;;  %v1332_v53 = vadd.f32 -1.4531521, %v1300_v24  ;;  %v3024_v40 = vpack.c.bf16 %v5004_v45, %v4250_v58 }
 0x215   : > { %v4692_v38 = vpop.eup %3332  ;;  %v1809_v29 = vsub.f32 0.0, %v1745_v3  ;;  %3338 = vpow2.f32 %v1681_v43  ;;  %3011 = vmatprep.subr.msk.bf16.mxu1 %vm4644_vm11, %v3009_v23  ;;  %v1902_v1 = vadd.f32 1.0, %v4623_v31  ;;  %v3027_v59 = vpack.c.bf16 %v4671_v8, %v4683_v60  ;;  %v5007_v34 = vld [vmem:[#allocation22_spill] sm:$0xff]  ;;  %v5008_v24 = vld [vmem:[#allocation21_spill] sm:$0xff]  ;;  %v5010_v60 = vld [vmem:[#allocation32_spill] sm:$0xff] }
 0x216   : > { %v1554_v48 = vmul.f32 %v4618_v21, %v1522_v28  ;;  %v1491_v32 = vmul.f32 %v4635_v44, %v1459_v62  ;;  %v1364_v51 = vmul.f32 %v4675_v50, %v1332_v53  ;;  %v1301_v0 = vmul.f32 1.0614054, %v4692_v38  ;;  %3014 = vmatpush3.bf16.xpose.msk.msra.mxu1 %vm4644_vm11, %v3012_v16 }
 0x217   : > { %v3335_v22 = vpop.eup %3334  ;;  %3017 = vmatprep.subr.msk.bf16.mxu1 %vm4644_vm11, %v3015_v56  ;;  %v1933_v31 = vmul.f32 %v1901_v11, %v4493_v5  ;;  %v1934_v42 = vmul.f32 %v1902_v1, %v4520_v12  ;;  %v3036_v21 = vpack.c.bf16 %v5006_v49, %v5005_v4  ;;  %v3048_v41 = vpack.c.bf16 %v4453_v15, %v4441_v19  ;;  %v5013_v49 = vld [vmem:[#allocation34_spill] sm:$0xff] }
 0x218   : > { %v1714_v6 = vmul.f32 %v3331_v14, %v1554_v48  ;;  %v1523_v36 = vadd.f32 0.2548296, %v1491_v32  ;;  %v1396_v20 = vadd.f32 1.4214138, %v1364_v51  ;;  %v1333_v47 = vadd.f32 -1.4531521, %v1301_v0 }
 0x219   : > { %v1841_v13 = vsel %vm1777_vm12, %v1745_v3, %v1809_v29  ;;  %v1683_v57 = vmul.f32 1.442695, %v1621_v33  ;;  %v1590_v63 = vsub.f32 0.0, %v4662_v2  ;;  %v3021_v43 = vpack.c.bf16 %v1934_v42, %v1933_v31  ;;  %v3355_v19 = vld [vmem:[%s3608_s13 + $0xf8] ss:$12 sps:$4 sm:$0xff]  }
 0x21a   : > { %v1746_v5 = vsub.f32 1.0, %v1714_v6  ;;  %v1555_v12 = vmul.f32 %v4635_v44, %v1523_v36  ;;  %v1428_v61 = vmul.f32 %v4675_v50, %v1396_v20  ;;  %v1365_v37 = vmul.f32 %v4692_v38, %v1333_v47  ;;  %v3356_v15 = vld [vmem:[%s3608_s13 + $0x38] ss:$12 sps:$4 sm:$0xff]  }
 0x21b   : > { %vm1778_vm13 = vcmp.ge.f32.partialorder %v4542_v39, 0.0  ;;  %3340 = vpow2.f32 %v1683_v57  ;;  %v1622_v3 = vmul.f32 %v1590_v63, %v4662_v2  ;;  %v1905_v46 = vadd.f32 1.0, %v1841_v13 }
 0x21c   : > { %v1810_v35 = vsub.f32 0.0, %v1746_v5  ;;  %v1715_v17 = vmul.f32 %v3335_v22, %v1555_v12  ;;  %v1460_v26 = vadd.f32 -0.28449672, %v1428_v61  ;;  %v1397_v54 = vadd.f32 1.4214138, %v1365_v37 }
 0x21d   : > { %v3337_v18 = vpop.eup %3336  ;;  %v5009_v14 = vpack.c.bf16 %v5007_v34, %v5008_v24  ;;  %v1873_v23 = vmul.f32 0.5, %v4503_v27  ;;  %v1874_v11 = vmul.f32 0.5, %v4542_v39  ;;  %v1685_v22 = vmul.f32 1.442695, %v1622_v3 }
 0x21e   : > { %v1842_v16 = vsel %vm1778_vm13, %v1746_v5, %v1810_v35  ;;  %v1747_v56 = vsub.f32 1.0, %v1715_v17  ;;  %v1492_v9 = vmul.f32 %v4675_v50, %v1460_v26  ;;  %v1429_v44 = vmul.f32 %v4692_v38, %v1397_v54  ;;  %v5011_v17 = vld [vmem:[#allocation31_spill] sm:$0xff] }
 0x21f   : > { %3020 = vmatpush3.bf16.xpose.msk.msra.mxu1 %vm4644_vm11, %v5009_v14  ;;  %v3339_v33 = vpop.eup %3338  ;;  %v1302_v28 = vmul.f32 1.0614054, %v3337_v18  ;;  %v1906_v2 = vadd.f32 1.0, %v1842_v16  ;;  %v1937_v1 = vmul.f32 %v1905_v46, %v1873_v23  ;;  %vm1779_vm14 = vcmp.ge.f32.partialorder %v4564_v55, 0.0 }
 0x220   : > { %3023 = vmatprep.subr.msk.bf16.mxu1 %vm4644_vm11, %v3021_v43  ;;  %v1524_v62 = vadd.f32 0.2548296, %v1492_v9  ;;  %v1461_v53 = vadd.f32 -0.28449672, %v1429_v44  ;;  %v1811_v32 = vsub.f32 0.0, %v1747_v56  ;;  %3342 = vpow2.f32 %v1685_v22 }
 0x221   : > { %v1334_v29 = vadd.f32 -1.4531521, %v1302_v28  ;;  %v1938_v48 = vmul.f32 %v1906_v2, %v1874_v11  ;;  %vm1780_vm15 = vcmp.ge.f32.partialorder %v4593_v30, 0.0  ;;  %v1875_v5 = vmul.f32 0.5, %v4564_v55  ;;  %v3353_v11 = vld [vmem:[%s3608_s13 + $0xe0] ss:$12 sps:$4 sm:$0xff]  }
 0x222   : > { %v1556_v51 = vmul.f32 %v4675_v50, %v1524_v62  ;;  %v1493_v0 = vmul.f32 %v4692_v38, %v1461_v53  ;;  %v1843_v36 = vsel %vm1779_vm14, %v1747_v56, %v1811_v32  ;;  %v1876_v45 = vmul.f32 0.5, %v4593_v30  ;;  %v3354_v28 = vld [vmem:[%s3608_s13 + $0x20] ss:$12 sps:$4 sm:$0xff]   ;;  %v3360_v2 = vld [vmem:[%s3608_s13 + $0x68] ss:$12 sps:$4 sm:$0xff]  }
 0x223   : > { %v1366_v31 = vmul.f32 %v3337_v18, %v1334_v29  ;;  %v3033_v27 = vpack.c.bf16 %v1938_v48, %v1937_v1  ;;  %v1907_v43 = vadd.f32 1.0, %v1843_v36  ;;  %vm1781_vm0 = vcmp.ge.f32.partialorder %v4597_v10, 0.0  ;;  %v3361_v62 = vld [vmem:[%s3608_s13 + $0x140] ss:$12 sps:$4 sm:$0xff]   ;;  %v3363_v29 = vld [vmem:[%s3608_s13 + $0x158] ss:$12 sps:$4 sm:$0xff]  }
 0x224   : > { %v1716_v42 = vmul.f32 %v3339_v33, %v1556_v51  ;;  %v1525_v39 = vadd.f32 0.2548296, %v1493_v0  ;;  %vm1782_vm1 = vcmp.ge.f32.partialorder %v4633_v52, 0.0  ;;  %v1877_v44 = vmul.f32 0.5, %v4597_v10  ;;  %v3351_v10 = vld [vmem:[%s3608_s13 + $0xc8] ss:$12 sps:$4 sm:$0xff]  }
 0x225   : > { %v1398_v6 = vadd.f32 1.4214138, %v1366_v31  ;;  %v3341_v50 = vpop.eup %3340  ;;  %v1939_v37 = vmul.f32 %v1907_v43, %v1875_v5  ;;  %v1878_v34 = vmul.f32 0.5, %v4633_v52  ;;  %v3352_v52 = vld [vmem:[%s3608_s13 + $0x8] ss:$12 sps:$4 sm:$0xff]   ;;  %vm2115_vm2 = vcmask 1040384  }
 0x226   : > { %v1748_v20 = vsub.f32 1.0, %v1716_v42  ;;  %v1557_v47 = vmul.f32 %v4692_v38, %v1525_v39  ;;  %v3362_v53 = vld [vmem:[%s3608_s13 + $0x80] ss:$12 sps:$4 sm:$0xff]   ;;  %v3364_v1 = vld [vmem:[%s3608_s13 + $0x98] ss:$12 sps:$4 sm:$0xff]   ;;  %vm3469_vm3 = vmmov 0  }
 0x227   : > { %3026 = vmatpush3.bf16.xpose.msk.msra.mxu1 %vm4644_vm11, %v3024_v40  ;;  %v1430_v13 = vmul.f32 %v3337_v18, %v1398_v6  ;;  %v3365_v48 = vld [vmem:[%s3608_s13 + $0x170] ss:$12 sps:$4 sm:$0xff]   ;;  %v3192_v5 = vld [vmem:[%s4929_s4 + $0x40] sm:$0xff]  }
 0x228   : > { %3029 = vmatprep.subr.msk.bf16.mxu1 %vm4644_vm11, %v3027_v59  ;;  %v1812_v57 = vsub.f32 0.0, %v1748_v20  ;;  %v1717_v63 = vmul.f32 %v3341_v50, %v1557_v47  ;;  %v5012_v59 = vpack.c.bf16 %v5010_v60, %v5011_v17  ;;  %v3366_v32 = vld [vmem:[%s3608_s13 + $0xb0] ss:$12 sps:$4 sm:$0xff]  }
 0x229   : > { %v1462_v38 = vadd.f32 -0.28449672, %v1430_v13  ;;  %v3199_v60 = vld [vmem:[%s4929_s4 + $0x10] sm:$0xff]   ;;  %v3201_v17 = vld [vmem:[%s4929_s4 + $0x58] sm:$0xff]  }
 0x22a   : > { %v1844_v58 = vsel %vm1780_vm15, %v1748_v20, %v1812_v57  ;;  %v1749_v12 = vsub.f32 1.0, %v1717_v63  ;;  %v3343_v3 = vpop.eup %3342 }
 0x22b   : > { %v1908_v40 = vadd.f32 1.0, %v1844_v58  ;;  %v1494_v61 = vmul.f32 %v3337_v18, %v1462_v38  ;;  %v3193_v58 = vld [vmem:[%s4929_s4] sm:$0xff]  }
 0x22c   : > { %v1813_v26 = vsub.f32 0.0, %v1749_v12 }
 0x22d   : > { %v1940_v35 = vmul.f32 %v1908_v40, %v1876_v45  ;;  %v1526_v8 = vadd.f32 0.2548296, %v1494_v61  ;;  %v3194_v45 = vld [vmem:[%s4929_s4 + $0x80] sm:$0xff]   ;;  %v3468_v40 = vmov 0.0   ;;  %v3197_v61 = vld [vmem:[%s4929_s4 + $0x88] sm:$0xff]  }
 0x22e   : > { %v1845_v46 = vsel %vm1781_vm0, %v1749_v12, %v1813_v26  ;;  %2983 = vmatprep.subr.bf16.mxu0 %v3468_v40  ;;  %v3195_v12 = vld [vmem:[%s4929_s4 + $0x48] sm:$0xff]   ;;  %v3202_v26 = vld [vmem:[%s4929_s4 + $0x18] sm:$0xff]  }
 0x22f   : > { %3032 = vmatpush3.bf16.xpose.msk.msra.mxu1 %vm4644_vm11, %v5012_v59  ;;  %v1558_v54 = vmul.f32 %v3337_v18, %v1526_v8  ;;  %v3039_v55 = vpack.c.bf16 %v1940_v35, %v1939_v37  ;;  %v1909_v18 = vadd.f32 1.0, %v1845_v46  ;;  %v3196_v37 = vld [vmem:[%s4929_s4 + $0x8] sm:$0xff]   ;;  %v3198_v35 = vld [vmem:[%s4929_s4 + $0x50] sm:$0xff]   ;;  %v3203_v59 = vld [vmem:[%s4929_s4 + $0x98] sm:$0xff]  }
 0x230   : > { %3035 = vmatprep.subr.msk.bf16.mxu1 %vm4644_vm11, %v3033_v27  ;;  %v3200_v8 = vld [vmem:[%s4929_s4 + $0x90] sm:$0xff]   ;;  %v3209_v46 = vld [vmem:[%s4929_s4 + $0xa8] sm:$0xff]  }
 0x231   : > { %v1718_v30 = vmul.f32 %v3343_v3, %v1558_v54  ;;  %v1941_v14 = vmul.f32 %v1909_v18, %v1877_v44  ;;  %v3204_v54 = vld [vmem:[%s4929_s4 + $0x60] sm:$0xff]   ;;  %v3212_v18 = vld [vmem:[%s4929_s4 + $0xb0] sm:$0xff]   ;;  %v3213_v44 = vld [vmem:[%s4929_s4 + $0x78] sm:$0xff]  }
 0x232   : > { %v3205_v3 = vld [vmem:[%s4929_s4 + $0x20] sm:$0xff]  }
 0x233   : > { %v1750_v16 = vsub.f32 1.0, %v1718_v30  ;;  %v3207_v30 = vld [vmem:[%s4929_s4 + $0x68] sm:$0xff]  }
 0x235   : > { %v1814_v56 = vsub.f32 0.0, %v1750_v16 }
 0x237   : > { %3038 = vmatpush3.bf16.xpose.msk.msra.mxu1 %vm4644_vm11, %v3036_v21  ;;  %v1846_v9 = vsel %vm1782_vm1, %v1750_v16, %v1814_v56  ;;  %v5014_v21 = vld [vmem:[#allocation33_spill] sm:$0xff] }
 0x238   : > { %3041 = vmatprep.subr.msk.bf16.mxu1 %vm4644_vm11, %v3039_v55  ;;  %v1910_v24 = vadd.f32 1.0, %v1846_v9  ;;  %v5015_v23 = vpack.c.bf16 %v5013_v49, %v5014_v21  ;;  %v3206_v55 = vld [vmem:[%s4929_s4 + $0xa0] sm:$0xff]   ;;  %v3208_v16 = vld [vmem:[%s4929_s4 + $0x28] sm:$0xff]   ;;  %v3210_v56 = vld [vmem:[%s4929_s4 + $0x70] sm:$0xff]  }
 0x239   : > { %v3211_v9 = vld [vmem:[%s4929_s4 + $0x30] sm:$0xff]  }
 0x23a   : > { %v1942_v33 = vmul.f32 %v1910_v24, %v1878_v34  ;;  %v3214_v34 = vld [vmem:[%s4929_s4 + $0x38] sm:$0xff]  }
 0x23b   : > { %v3215_v24 = vld [vmem:[%s4929_s4 + $0xb8] sm:$0xff]  }
 0x23c   : > { %v3045_v4 = vpack.c.bf16 %v1942_v33, %v1941_v14 }
 0x23f   : > { %3044 = vmatpush3.bf16.xpose.msk.msra.mxu1 %vm4644_vm11, %v5015_v23 }
 0x240   : > { %3047 = vmatprep.subr.msk.bf16.mxu1 %vm4644_vm11, %v3045_v4 }
 0x247   : > { %3050 = vmatpush3.bf16.xpose.msk.msra.mxu1 %vm4644_vm11, %v3048_v41  ;;  %v3358_v41 = vld [vmem:[%s3608_s13 + $0x50] ss:$12 sps:$4 sm:$0xff]  }
 0x248   : > { %2882 = vmatprep.subr.bf16.mxu1 %v3351_v10 }
 0x24e   : > { %2881 = vmatmul.mubr.msk.f32.vlgmr.msra.gmra.mrb[32].mxu1 %vm1944_vm10, %v4630_v25  ;;  %v3359_v25 = vld [vmem:[%s3608_s13 + $0x128] ss:$12 sps:$4 sm:$0xff]   ;;  %s2496_s13 = scalar_lea.sflag [#allocation4], %s3604_s28 }
 0x24f   : > { %2883 = vmatpush3.bf16.msra.mxu1 %v3352_v52 }
 0x250   : > { %2884 = vmatprep.subr.bf16.mxu1 %v3353_v11 }
 0x253   : > { %2885 = vmatpush3.bf16.msra.mxu1 %v3354_v28 }
 0x254   : > { %2886 = vmatprep.subr.bf16.mxu1 %v3355_v19 }
 0x257   : > { %2887 = vmatpush3.bf16.msra.mxu1 %v3356_v15 }
 0x258   : > { %2888 = vmatprep.subr.bf16.mxu1 %v3357_v7 }
 0x25b   : > { %2889 = vmatpush3.bf16.msra.mxu1 %v3358_v41 }
 0x25c   : > { %2890 = vmatprep.subr.bf16.mxu1 %v3359_v25 }
 0x25f   : > { %2891 = vmatpush3.bf16.msra.mxu1 %v3360_v2 }
 0x260   : > { %2892 = vmatprep.subr.bf16.mxu1 %v3361_v62 }
 0x263   : > { %2893 = vmatpush3.bf16.msra.mxu1 %v3362_v53 }
 0x264   : > { %2894 = vmatprep.subr.bf16.mxu1 %v3363_v29 }
 0x267   : > { %2895 = vmatpush3.bf16.msra.mxu1 %v3364_v1 }
 0x268   : > { %2896 = vmatprep.subr.bf16.mxu1 %v3365_v48 }
 0x26b   : > { %2897 = vmatpush3.bf16.msra.mxu1 %v3366_v32 }
 0x26c   : > { %2904 = vmatprep.subr.bf16.mxu1 %v3192_v5 }
 0x321   : > { %v2110_v51 = vpop.f32.mrb[32].mxu1 }
 0x322   : > { %v2112_v0 = vpop.f32.mrb[33].mxu1  ;;  %v2116_v22 = vsel %vm2115_vm2, %v2110_v51, -inf }
 0x323   : > { %v2117_v31 = vsel %vm2115_vm2, %v2112_v0, -inf }
 0x324   : > { %v2118_v27 = vmax.f32 %v2116_v22, %v2117_v31  ;;  %v2492_v22 = vld [vmem:[%s4930_s5] sm:$0x1] }
 0x326   : > { %2119 = vmax.xlane.f32.xlu0 %v2118_v27 }
 0x3b3   : > { %v2120_v42 = vpop.xlane.xlu0 %2119 }
 0x3b4   : > { %v2121_v39 = vsub.f32 %v2110_v51, %v2120_v42  ;;  %v2122_v6 = vsub.f32 %v2112_v0, %v2120_v42 }
 0x3b6   : > { %v2123_v36 = vmul.f32 1.442695, %v2121_v39  ;;  %v2125_v20 = vmul.f32 1.442695, %v2122_v6 }
 0x3b8   : > { %3344 = vpow2.f32 %v2123_v36 }
 0x3b9   : > { %3346 = vpow2.f32 %v2125_v20 }
 0x3c2   : > { %v3345_v47 = vpop.eup %3344 }
 0x3c3   : > { %v3347_v50 = vpop.eup %3346  ;;  %v2133_v13 = vpack.c.bf16 %v3345_v47, %v3345_v47  ;;  %v2127_v57 = vsel %vm2115_vm2, %v3345_v47, 0.0 }
 0x3c4   : > { %v2134_v63 = vpack.c.bf16 %v3347_v50, %v3347_v50  ;;  %v2128_v43 = vsel %vm2115_vm2, %v3347_v50, 0.0 }
 0x3c5   : > { %v2129_v38 = vadd.f32 %v2128_v43, %v2127_v57 }
 0x3c6   : > { %2167 = vmatprep.mubr.bf16.mxu0 %v2134_v63  ;;  %2208 = vmatprep.mubr.bf16.mxu1 %v2134_v63 }
 0x3c7   : > { %2168 = vmatmul.mubr.bf16.vlgmr.msra.gmra.mrb[64].mxu0 %v2133_v13  ;;  %2209 = vmatmul.mubr.bf16.vlgmr.msra.gmra.mrb[36].mxu1 %v2133_v13 }
 0x3c8   : > { %2130 = vadd.xlane.f32.xlu0 %v2129_v38  ;;  %2984 = vmatpush3.bf16.msra.mxu0 %v3194_v45 }
 0x3c9   : > { %2905 = vmatpush3.bf16.msra.mxu1 %v3193_v58  ;;  %2985 = vmatprep.subr.bf16.mxu0 %v3468_v40 }
 0x3ca   : > { %2906 = vmatprep.subr.bf16.mxu1 %v3195_v12  ;;  %2999 = vmatprep.mubr.msk.bf16.mxu0 %vm3469_vm3, %v3468_v40 }
 0x3cc   : > { %2986 = vmatpush3.bf16.msra.mxu0 %v3197_v61 }
 0x3cd   : > { %2907 = vmatpush3.bf16.msra.mxu1 %v3196_v37  ;;  %2987 = vmatprep.subr.bf16.mxu0 %v3468_v40 }
 0x3ce   : > { %2908 = vmatprep.subr.bf16.mxu1 %v3198_v35 }
 0x3d0   : > { %2988 = vmatpush3.bf16.msra.mxu0 %v3200_v8 }
 0x3d1   : > { %2909 = vmatpush3.bf16.msra.mxu1 %v3199_v60  ;;  %2989 = vmatprep.subr.bf16.mxu0 %v3468_v40 }
 0x3d2   : > { %2910 = vmatprep.subr.bf16.mxu1 %v3201_v17 }
 0x3d4   : > { %2990 = vmatpush3.bf16.msra.mxu0 %v3203_v59 }
 0x3d5   : > { %2911 = vmatpush3.bf16.msra.mxu1 %v3202_v26  ;;  %2991 = vmatprep.subr.bf16.mxu0 %v3468_v40 }
 0x3d6   : > { %2912 = vmatprep.subr.bf16.mxu1 %v3204_v54 }
 0x3d8   : > { %2992 = vmatpush3.bf16.msra.mxu0 %v3206_v55 }
 0x3d9   : > { %2913 = vmatpush3.bf16.msra.mxu1 %v3205_v3  ;;  %2993 = vmatprep.subr.bf16.mxu0 %v3468_v40 }
 0x3da   : > { %2914 = vmatprep.subr.bf16.mxu1 %v3207_v30 }
 0x3dc   : > { %2994 = vmatpush3.bf16.msra.mxu0 %v3209_v46 }
 0x3dd   : > { %2915 = vmatpush3.bf16.msra.mxu1 %v3208_v16  ;;  %2995 = vmatprep.subr.bf16.mxu0 %v3468_v40 }
 0x3de   : > { %2916 = vmatprep.subr.bf16.mxu1 %v3210_v56 }
 0x3e0   : > { %2996 = vmatpush3.bf16.msra.mxu0 %v3212_v18 }
 0x3e1   : > { %2917 = vmatpush3.bf16.msra.mxu1 %v3211_v9  ;;  %2997 = vmatprep.subr.bf16.mxu0 %v3468_v40 }
 0x3e2   : > { %2918 = vmatprep.subr.bf16.mxu1 %v3213_v44 }
 0x3e4   : > { %2998 = vmatpush3.bf16.msra.mxu0 %v3215_v24 }
 0x3e5   : > { %2919 = vmatpush3.bf16.msra.mxu1 %v3214_v34 }
 0x455   : > { %v2131_v7 = vpop.xlane.xlu0 %2130 }
 0x456   : > { %3348 = vrcp.f32 %v2131_v7 }
 0x460   : > { %v3349_v0 = vpop.eup %3348 }
 0x49a   : > { %v2169_v14 = vpop.f32.mrb[64].mxu0  ;;  %v2898_v33 = vpop.f32.mrb[36].mxu1 }
 0x49b   : > { %v2171_v4 = vpop.f32.mrb[65].mxu0  ;;  %v2899_v49 = vpop.f32.mrb[37].mxu1  ;;  %v2216_v11 = vpack.c.bf16 %v2169_v14, %v2169_v14 }
 0x49c   : > { %v2217_v21 = vpack.c.bf16 %v2171_v4, %v2171_v4  ;;  %v2900_v23 = vadd.f32 %v2899_v49, %v2898_v33  ;;  %v2173_v10 = vpop.f32.mrb[66].mxu0  ;;  %v2901_v52 = vpop.f32.mrb[38].mxu1 }
 0x49d   : > { %v2174_v28 = vpop.f32.mrb[67].mxu0  ;;  %v2902_v19 = vpop.f32.mrb[39].mxu1 }
 0x49e   : > { %v2218_v15 = vpack.c.bf16 %v2900_v23, %v2900_v23  ;;  %2443 = vmatprep.mubr.bf16.mxu1 %v2217_v21 }
 0x49f   : > { %2444 = vmatmul.mubr.bf16.vlgmr.msra.gmra.mrb[40].mxu1 %v2216_v11 }
 0x4a0   : > { %3000 = vmatmul.mubr.bf16.vlgmr.msra.gmra.mrb[68].mxu0 %v2218_v15 }
 0x572   : > { %v2920_v41 = vpop.f32.mrb[40].mxu1 }
 0x573   : > { %v2921_v25 = vpop.f32.mrb[41].mxu1  ;;  %v2485_v2 = vpop.f32.mrb[68].mxu0 }
 0x574   : > { %v2922_v62 = vadd.f32 %v2921_v25, %v2920_v41  ;;  %v2923_v53 = vpop.f32.mrb[42].mxu1  ;;  %v3001_v29 = vpop.f32.mrb[69].mxu0 }
 0x575   : > { %v2924_v1 = vpop.f32.mrb[43].mxu1  ;;  %v2488_v48 = vpop.f32.mrb[70].mxu0 }
 0x576   : > { %v2486_v32 = vadd.f32 %v2922_v62, %v2485_v2  ;;  %v3002_v51 = vpop.f32.mrb[71].mxu0 }
 0x578   : > { %v2491_v31 = vmul.f32 %v3349_v0, %v2486_v32 }
 0x57a   : > { %v2493_v27 = vadd.f32 %v2492_v22, %v2491_v31 }
 0x57c   : > { %2494 = vst [vmem:[%s268_s26] sm:$0x1] %v2493_v27 }
 0x57d   : > { %3410 = shalt.err (!%p3407_p2)
}
 0x57e   : > { %s3411_s28 = scalar_lea.hbm %s4881_s16, 16  ;;  %s3415_s17 = scalar_lea.hbm %s4931_s6, 32 }
 0x57f   : > { %p3412_p4 = scmp.ne.s32.totalorder %s4881_s16, %s3411_s28  ;;  %p3416_p9 = scmp.lt.u32.totalorder %s4881_s16, %s4931_s6 }
 0x580   : > { %p3417_p1 = scmp.lt.u32.totalorder %s3415_s17, %s3411_s28  ;;  %p3419_p6 = scmp.lt.u32.totalorder %s3411_s28, %s4881_s16 }
 0x581   : > { %p3413_p5 = pnand %p3412_p4, %p5016_p11 }
 0x582   : > { %p3418_p3 = por %p3417_p1, %p3416_p9 }
 0x583   : > { %p3414_p7 = pneg %p3413_p5 }
 0x584   : > { %p3420_p12 = por %p3419_p6, %p3418_p3 }
 0x586   : > { %p3421_p13 = pnand %p3420_p12, %p3414_p7 }
 0x588   : > { %3424 = shalt.err (!%p3421_p13)
}
 0x589   : > { %3056 = dma.vmem_to_hbm [thread:$0]  (%p5016_p11), %s4883_s29, 16, %s4881_s16, %s2496_s13  }
 0x58a PF: > { %s2520_s26 = sand.u32 1, %s3451_s21   ;;  %p5017_p8 = scmp.ne.s32.totalorder %s4946_s9, 0 }
 0x58b   : > { %p5018_p10 = scmp.ge.s32.totalorder %s3463_s24, 2  ;;  %s2521_s11 = scalar_lea.sflag [#allocation4], %s2520_s26 }
 0x58d   : > { %p3063_p0 = pnand %p5018_p10, %p5017_p8 }
 0x58f   : > { %3446 = dma.done.wait (!%p3063_p0), %s2521_s11, 16  }
 0x590   : > { %3448 = vsyncadd (!%p3063_p0), %s2521_s11, 4294967280  ;;  %p19_p2 = scmp.ge.s32.totalorder %s3531_s27, 4   ;;  %s5019_s21 = smov %s3455_s22 }
 0x591   : > { %s5020_s22 = smov %s3459_s23  ;;  %s5021_s23 = smov %s3543_s30 }
 0x592   : > { %s5022_s24 = smov %s3531_s27  ;;  %21 = sbr.rel (!%p19_p2) target bundleno = 5 (0x5), region = 89 }
 0x599   :  { %2525 = vsyncpa [#allocation3], 1 }
 0x59a   :  { %2527 = vsyncpa [#allocation3 + $0x1], 1 }
 0x59b   :  { %2528 = vsyncpa [#allocation4], 1 }
 0x59c   :  { %2530 = vsyncpa [#allocation4 + $0x1], 1 }

</bundles_post_ra>
